<compile_context>
chip_gen: v7x
topology: tpu7x:2x2x1
jax: 0.10.0
libtpu: 0.0.40
codegen_flags: <defaults>
</compile_context>

<pallas_src>
import functools

import jax
import jax.numpy as jnp
from jax.experimental import pallas as pl
from jax.experimental.pallas import tpu as pltpu


def _round_up(x, m):
    return (x + m - 1) // m * m


def graphconv_kernel(*refs, project_first, norm, use_bias):
    """Hot loop: acc += adj_tile @ operand_tile (bf16 x bf16, f32 accumulate).

    operand is either the pre-projected (nrm*feat) @ W (project-first) or the
    pre-normalized feat (aggregate-first); in the latter case the projection
    runs once per row tile in the finalize branch.
    """
    if project_first:
        adj_ref, op_ref, nrm_dst_ref, b_ref, out_ref, acc_ref = refs
        w_ref = None
    else:
        adj_ref, op_ref, w_ref, nrm_dst_ref, b_ref, out_ref, acc_ref = refs

    k = pl.program_id(1)

    @pl.when(k == 0)
    def _init():
        acc_ref[...] = jnp.zeros_like(acc_ref)

    # int8 (0/1) adjacency tile from HBM; upcast to bf16 just before the MXU.
    adj = adj_ref[...].astype(jnp.bfloat16)          # (TM, TK)
    acc_ref[...] += jnp.dot(adj, op_ref[...],        # (TK, acc_width) bf16
                            preferred_element_type=jnp.float32)

    @pl.when(k == pl.num_programs(1) - 1)
    def _finalize():
        rst = acc_ref[...]
        if not project_first:
            # Projection once per row tile: bf16 operands, f32 accumulation
            # (no f32 weight copy, runs at the bf16 MXU rate).
            rst = jnp.dot(rst.astype(jnp.bfloat16), w_ref[...],
                          preferred_element_type=jnp.float32)
        if norm:
            rst = rst * nrm_dst_ref[...]             # destination-side normalizer
        if use_bias:
            rst = rst + b_ref[...]
        # TODO(synk): optional `activation` callable (None by default) not applied.
        out_ref[...] = rst.astype(out_ref.dtype)


def graph_conv(feat, adj, weight, bias=None, norm=True, *, tm=512, tk=256):
    """GCN layer forward: rst = nrm * (adj @ ((nrm * feat) @ W)) + bias."""
    N, fin = feat.shape
    fin_w, fout = weight.shape
    assert fin_w == fin
    use_bias = bias is not None

    LANE = 128
    f32, bf16 = jnp.float32, jnp.bfloat16
    fin_p = _round_up(fin, LANE)
    fout_p = _round_up(fout, LANE)

    # ---- tile selection (lane-aligned, megacore-friendly) -------------------
    nmin = _round_up(N, LANE)
    tm = max(LANE, min(_round_up(tm, LANE), nmin))
    tk = max(LANE, min(_round_up(tk, LANE), nmin))
    # Keep >= 2 row tiles when the graph is large enough so the "parallel" row
    # axis can shard across v7x's two TensorCores.
    if _round_up(N, tm) // tm < 2 and N > LANE:
        tm = max(LANE, _round_up((N + 1) // 2, LANE))
    # Padded node dim must be divisible by both tm and tk (both are multiples
    # of 128, so this terminates quickly).
    n_p = _round_up(N, max(tm, tk))
    while n_p % tm or n_p % tk:
        n_p += LANE

    # ---- normalization (single fused pass for the degree) -------------------
    if norm:
        deg = jnp.sum(adj, axis=1, keepdims=True, dtype=f32)   # (N, 1) in-degrees
        nrm = jnp.where(deg > 0, jax.lax.rsqrt(deg), 0.0)
        feat_n = feat.astype(f32) * nrm                        # fold source norm once
    else:
        nrm = None
        feat_n = feat.astype(f32)

    # Lane-tile-aware ordering: project first only if it shrinks the operand.
    project_first = fin_p > fout_p
    acc_width = fout_p if project_first else fin_p

    if project_first:
        # Pre-project once in plain XLA; kernel streams the narrower h.
        op = feat_n @ weight.astype(f32)                       # (N, fout) f32
        op_p = jnp.pad(op.astype(bf16), ((0, n_p - N), (0, fout_p - fout)))
    else:
        op_p = jnp.pad(feat_n.astype(bf16), ((0, n_p - N), (0, fin_p - fin)))
        w_p = jnp.pad(weight.astype(bf16), ((0, fin_p - fin), (0, fout_p - fout)))

    # 1-byte adjacency (0/1 exact), single pad pass.
    adj_p = jnp.pad(adj.astype(jnp.int8), ((0, n_p - N), (0, n_p - N)))

    if norm:
        nrm_p = jnp.pad(nrm, ((0, n_p - N), (0, 0)))
    else:
        nrm_p = jnp.ones((n_p, 1), f32)                        # unused in kernel
    b_p = jnp.zeros((1, fout_p), f32)
    if use_bias:
        b_p = b_p.at[0, :fout].set(bias.reshape(-1).astype(f32))

    grid = (n_p // tm, n_p // tk)                              # (row tiles, K tiles)

    in_specs = [
        pl.BlockSpec((tm, tk), lambda i, k: (i, k)),           # adj tile (int8)
        pl.BlockSpec((tk, acc_width), lambda i, k: (k, 0)),    # operand (sources)
    ]
    inputs = [adj_p, op_p]
    if not project_first:
        in_specs.append(pl.BlockSpec((fin_p, fout_p), lambda i, k: (0, 0)))  # weight
        inputs.append(w_p)
    in_specs += [
        pl.BlockSpec((tm, 1), lambda i, k: (i, 0)),            # nrm (destinations)
        pl.BlockSpec((1, fout_p), lambda i, k: (0, 0)),        # bias
    ]
    inputs += [nrm_p, b_p]

    kernel = functools.partial(graphconv_kernel, project_first=project_first,
                               norm=norm, use_bias=use_bias)

    out_p = pl.pallas_call(
        kernel,
        out_shape=jax.ShapeDtypeStruct((n_p, fout_p), f32),
        grid_spec=pltpu.PrefetchScalarGridSpec(
            num_scalar_prefetch=0,
            grid=grid,
            in_specs=in_specs,
            out_specs=pl.BlockSpec((tm, fout_p), lambda i, k: (i, 0)),
            scratch_shapes=[pltpu.VMEM((tm, acc_width), f32)],
        ),
        compiler_params=pltpu.CompilerParams(
            dimension_semantics=("parallel", "arbitrary")),
    )(*inputs)

    return out_p[:N, :fout]


def _reference(feat, adj, weight, bias, norm=True):
    feat = feat.astype(jnp.float32)
    adj = adj.astype(jnp.float32)
    if norm:
        deg = jnp.sum(adj, axis=1, keepdims=True)
        nrm = jnp.where(deg > 0, deg ** -0.5, 0.0)
        feat = feat * nrm
    if feat.shape[1] > weight.shape[1]:
        rst = adj @ (feat @ weight)
    else:
        rst = (adj @ feat) @ weight
    if norm:
        rst = rst * nrm
    if bias is not None:
        rst = rst + bias
    return rst


if __name__ == "__main__":
    key = jax.random.PRNGKey(0)
    k1, k2, k3 = jax.random.split(key, 3)

    N = 512  # number of nodes

    # Synthetic graph: self-loop + ring edge i -> (i+1) % N.  adj[dst, src] = 1.
    src = jnp.concatenate([jnp.arange(N), jnp.arange(N)])
    dst = jnp.concatenate([jnp.arange(N), (jnp.arange(N) + 1) % N])
    adj = jnp.zeros((N, N), jnp.float32).at[dst, src].add(1.0)

    # Exercise both branches: aggregate-first (fin_p == fout_p) and
    # project-first (fin_p > fout_p).
    configs = [((32, 8), k1, k2), ((160, 8), k2, k3)]
    for (in_feats, out_feats), k_feat, k_w in configs:
        feat = jax.random.normal(k_feat, (N, in_feats), dtype=jnp.float32)
        limit = (6.0 / (in_feats + out_feats)) ** 0.5  # Glorot uniform
        weight = jax.random.uniform(k_w, (in_feats, out_feats),
                                    minval=-limit, maxval=limit,
                                    dtype=jnp.float32)
        bias = jnp.zeros((out_feats,), jnp.float32)

        out = graph_conv(feat, adj, weight, bias, norm=True)
        out = jax.block_until_ready(out)

        ref = _reference(feat, adj, weight, bias, norm=True)
        assert out.shape == (N, out_feats)
        # bf16 operands (intentional) -> compare against the f32 reference
        # with bf16-appropriate tolerance.
        assert jnp.allclose(out, ref, atol=3e-2, rtol=3e-2), (
            float(jnp.max(jnp.abs(out - ref))))

    print("KERNEL_OK")
</pallas_src>

<mosaic_0001>
module attributes {stable_mosaic.version = 11 : i64} {
  func.func @graphconv_kernel(%arg0: i32, %arg1: i32, %arg2: memref<256x256xi8, #tpu.memory_space<vmem>>, %arg3: memref<256x128xbf16, #tpu.memory_space<vmem>>, %arg4: memref<128x128xbf16, #tpu.memory_space<vmem>>, %arg5: memref<256x1xf32, #tpu.memory_space<vmem>>, %arg6: memref<1x128xf32, #tpu.memory_space<vmem>>, %arg7: memref<256x128xf32, #tpu.memory_space<vmem>>, %arg8: memref<256x128xf32, #tpu.memory_space<vmem>>) attributes {dimension_semantics = [#tpu.dimension_semantics<parallel>, #tpu.dimension_semantics<arbitrary>], iteration_bounds = array<i64: 2, 2>, scalar_prefetch = 0 : i64, scratch_operands = 1 : i64, tpu.core_type = #tpu.core_type<tc>, window_params = [{transform_indices = @transform_0, window_bounds = array<i64: 256, 256>}, {transform_indices = @transform_1, window_bounds = array<i64: 256, 128>}, {pipeline_mode = #tpu.pipeline_mode<synchronous>, transform_indices = @transform_2, window_bounds = array<i64: 128, 128>}, {transform_indices = @transform_3, window_bounds = array<i64: 256, 1>}, {pipeline_mode = #tpu.pipeline_mode<synchronous>, transform_indices = @transform_4, window_bounds = array<i64: 1, 128>}, {transform_indices = @transform_5, window_bounds = array<i64: 256, 128>}]} {
    %c0_i32 = arith.constant 0 : i32
    %0 = arith.cmpi eq, %arg1, %c0_i32 : i32
    %1 = arith.extui %0 : i1 to i32
    %c0_i32_0 = arith.constant 0 : i32
    %2 = arith.cmpi ne, %1, %c0_i32_0 : i32
    scf.if %2 {
      %cst_9 = arith.constant 0.000000e+00 : f32
      %13 = vector.broadcast %cst_9 : f32 to vector<256x128xf32>
      %c0_10 = arith.constant 0 : index
      %c0_11 = arith.constant 0 : index
      %14 = vector.load %arg8[%c0_10, %c0_11] : memref<256x128xf32, #tpu.memory_space<vmem>>, vector<256x128xf32>
      tpu.vector_store %arg8[%c0_10, %c0_11], %13 {strides = array<i32>} : memref<256x128xf32, #tpu.memory_space<vmem>>, vector<256x128xf32>,
    } else {
    }
    %c0 = arith.constant 0 : index
    %c0_1 = arith.constant 0 : index
    %3 = vector.load %arg2[%c0, %c0_1] : memref<256x256xi8, #tpu.memory_space<vmem>>, vector<256x256xi8>
    %4 = arith.sitofp %3 : vector<256x256xi8> to vector<256x256xbf16>
    %c0_2 = arith.constant 0 : index
    %c0_3 = arith.constant 0 : index
    %5 = vector.load %arg8[%c0_2, %c0_3] : memref<256x128xf32, #tpu.memory_space<vmem>>, vector<256x128xf32>
    %c0_4 = arith.constant 0 : index
    %c0_5 = arith.constant 0 : index
    %6 = vector.load %arg3[%c0_4, %c0_5] : memref<256x128xbf16, #tpu.memory_space<vmem>>, vector<256x128xbf16>
    %cst = arith.constant dense<0.000000e+00> : vector<256x128xf32>
    %7 = tpu.matmul %4, %6, %cst {dimension_numbers = #tpu.dot_dimension_numbers<[1], [0], [0], [1], [0, 0, 1, 1], [], []>} : vector<256x256xbf16>, vector<256x128xbf16>, vector<256x128xf32> -> vector<256x128xf32>
    %8 = arith.addf %5, %7 : vector<256x128xf32>
    %c0_6 = arith.constant 0 : index
    %c0_7 = arith.constant 0 : index
    %9 = vector.load %arg8[%c0_6, %c0_7] : memref<256x128xf32, #tpu.memory_space<vmem>>, vector<256x128xf32>
    tpu.vector_store %arg8[%c0_6, %c0_7], %8 {strides = array<i32>} : memref<256x128xf32, #tpu.memory_space<vmem>>, vector<256x128xf32>,
    %c1_i32 = arith.constant 1 : i32
    %10 = arith.cmpi eq, %arg1, %c1_i32 : i32
    %11 = arith.extui %10 : i1 to i32
    %c0_i32_8 = arith.constant 0 : i32
    %12 = arith.cmpi ne, %11, %c0_i32_8 : i32
    scf.if %12 {
      %c0_9 = arith.constant 0 : index
      %c0_10 = arith.constant 0 : index
      %13 = vector.load %arg8[%c0_9, %c0_10] : memref<256x128xf32, #tpu.memory_space<vmem>>, vector<256x128xf32>
      %14 = arith.truncf %13 : vector<256x128xf32> to vector<256x128xbf16>
      %c0_11 = arith.constant 0 : index
      %c0_12 = arith.constant 0 : index
      %15 = vector.load %arg4[%c0_11, %c0_12] : memref<128x128xbf16, #tpu.memory_space<vmem>>, vector<128x128xbf16>
      %cst_13 = arith.constant dense<0.000000e+00> : vector<256x128xf32>
      %16 = tpu.matmul %14, %15, %cst_13 {dimension_numbers = #tpu.dot_dimension_numbers<[1], [0], [0], [1], [0, 0, 1, 1], [], []>} : vector<256x128xbf16>, vector<128x128xbf16>, vector<256x128xf32> -> vector<256x128xf32>
      %c0_14 = arith.constant 0 : index
      %c0_15 = arith.constant 0 : index
      %17 = vector.load %arg5[%c0_14, %c0_15] : memref<256x1xf32, #tpu.memory_space<vmem>>, vector<256x1xf32>
      %18 = vector.broadcast %17 : vector<256x1xf32> to vector<256x128xf32>
      %19 = arith.mulf %16, %18 : vector<256x128xf32>
      %c0_16 = arith.constant 0 : index
      %c0_17 = arith.constant 0 : index
      %20 = vector.load %arg6[%c0_16, %c0_17] : memref<1x128xf32, #tpu.memory_space<vmem>>, vector<1x128xf32>
      %21 = vector.broadcast %20 : vector<1x128xf32> to vector<256x128xf32>
      %22 = arith.addf %19, %21 : vector<256x128xf32>
      %c0_18 = arith.constant 0 : index
      %c0_19 = arith.constant 0 : index
      %23 = vector.load %arg7[%c0_18, %c0_19] : memref<256x128xf32, #tpu.memory_space<vmem>>, vector<256x128xf32>
      tpu.vector_store %arg7[%c0_18, %c0_19], %22 {strides = array<i32>} : memref<256x128xf32, #tpu.memory_space<vmem>>, vector<256x128xf32>,
    } else {
    }
    return
  }
  func.func @transform_0(%arg0: i32, %arg1: i32) -> (i32, i32) {
    %c0_i32 = arith.constant 0 : i32
    return %arg0, %arg1 : i32, i32
  }
  func.func @transform_1(%arg0: i32, %arg1: i32) -> (i32, i32) {
    %c0_i32 = arith.constant 0 : i32
    %c0_i32_0 = arith.constant 0 : i32
    return %arg1, %c0_i32 : i32, i32
  }
  func.func @transform_2(%arg0: i32, %arg1: i32) -> (i32, i32) {
    %c0_i32 = arith.constant 0 : i32
    %c0_i32_0 = arith.constant 0 : i32
    %c0_i32_1 = arith.constant 0 : i32
    return %c0_i32, %c0_i32_0 : i32, i32
  }
  func.func @transform_3(%arg0: i32, %arg1: i32) -> (i32, i32) {
    %c0_i32 = arith.constant 0 : i32
    %c0_i32_0 = arith.constant 0 : i32
    return %arg0, %c0_i32 : i32, i32
  }
  func.func @transform_4(%arg0: i32, %arg1: i32) -> (i32, i32) {
    %c0_i32 = arith.constant 0 : i32
    %c0_i32_0 = arith.constant 0 : i32
    %c0_i32_1 = arith.constant 0 : i32
    return %c0_i32, %c0_i32_0 : i32, i32
  }
  func.func @transform_5(%arg0: i32, %arg1: i32) -> (i32, i32) {
    %c0_i32 = arith.constant 0 : i32
    %c0_i32_0 = arith.constant 0 : i32
    return %arg0, %c0_i32 : i32, i32
  }
}

</mosaic_0001>

<bundles_post_ra>
// kernel: tpu_custom_call.1
= control target key start
LH: loop header
LB: loop body
LE: loop exit
PB: predicated region body
PF: predicated region fallthrough
CT: control target
= control target key end

     0   :  { %s2729_s0 = inlined_call_operand.vmem [shape: s8[512,512], index: 0, kind: input, shape index: {}]   ;;  %s2730_s1 = inlined_call_operand.hbm [shape: bf16[512,128], index: 1, kind: input, shape index: {}]   ;;  %s2731_s2 = inlined_call_operand.hbm [shape: bf16[128,128], index: 2, kind: input, shape index: {}]   ;;  %s2732_s3 = inlined_call_operand.vmem [shape: f32[512,1], index: 3, kind: input, shape index: {}]   ;;  %s2733_s4 = inlined_call_operand.vmem [shape: f32[1,128], index: 4, kind: input, shape index: {}]   ;;  %s2734_s5 = inlined_call_operand.hbm [shape: f32[512,128], index: 5, kind: output, shape index: {}]  }
   0x1   :  { %2749 = sst [smem:[#allocation23_spill]] %s2733_s4 }
   0x2   :  { %2750 = sst [smem:[#allocation24_spill]] %s2734_s5 }
   0x3   :  { %10 = vsyncpa [#allocation5], 0 }
   0x4   :  { %12 = vsyncpa [#allocation5 + $0x1], 0 }
   0x5   :  { %13 = vsyncpa [#allocation8], 0 }
   0x6   :  { %14 = vsyncpa [#allocation6], 0 }
   0x7   :  { %16 = vsyncpa [#allocation6 + $0x1], 0  ;;  %s2224_s18 = smov 0   ;;  %s2226_s19 = smov 0  }
   0x8   :  { %s2228_s20 = smov 0   ;;  %s2230_s21 = smov 0  }
   0x9   :  { %s2232_s22 = smov 0   ;;  %s2234_s23 = smov 0  }
   0xa   :  { %s2236_s24 = smov 0   ;;  %s2238_s25 = smov 0  }
   0xb   :  { %s2240_s26 = smov 0   ;;  %s2242_s27 = smov 0  }
   0xc   :  { %s2244_s28 = smov 0   ;;  %s2246_s29 = smov 0  }
   0xd   :  { %s2248_s30 = smov 0  }
   0xe LB: > { %2751 = sst [smem:[#allocation13_spill]] %s2133_s18  ;;  %s1554_s6 = sadd.s32 4294967295, %s2181_s30   ;;  %s2181_s30 = sphi %s2248_s30, %s22_s30   ;;  %s2177_s29 = sphi %s2246_s29, %s2802_s29   ;;  %s2173_s28 = sphi %s2244_s28, %s2801_s28   ;;  %s2169_s27 = sphi %s2242_s27, %s2800_s27   ;;  %s2165_s26 = sphi %s2240_s26, %s2799_s26   ;;  %s2161_s25 = sphi %s2238_s25, %s2798_s25   ;;  %s2157_s24 = sphi %s2236_s24, %s2797_s24   ;;  %s2153_s23 = sphi %s2234_s23, %s2796_s23   ;;  %s2149_s22 = sphi %s2232_s22, %s2795_s22   ;;  %s2145_s21 = sphi %s2230_s21, %s2794_s21   ;;  %s2141_s20 = sphi %s2228_s20, %s2786_s20   ;;  %s2137_s19 = sphi %s2226_s19, %s2793_s19   ;;  %s2133_s18 = sphi %s2224_s18, %s2792_s18  }
   0xf   : > { %2752 = sst [smem:[#allocation14_spill]] %s2141_s20  ;;  %s31_s8 = sadd.s32 1, %s2173_s28 }
  0x10   : > { %2753 = sst [smem:[#allocation15_spill]] %s2165_s26  ;;  %s34_s9 = sadd.s32 1, %s2177_s29 }
  0x11   : > { %p32_p0 = scmp.ge.s32.totalorder %s31_s8, 2  ;;  %s43_s10 = sadd.s32 1, %s2161_s25 }
  0x12   : > { %p50_p1 = scmp.ne.s32.totalorder %s2161_s25, %s2157_s24  ;;  %p51_p2 = scmp.eq.s32.totalorder %s2181_s30, 0 }
  0x13   : > { %s2804_s8 = smov (%p32_p0, %s31_s8), 0  ;;  %s2806_s9 = smov (!%p32_p0, %s34_s9), %s2177_s29 }
  0x14   : > { %2754 = sst [smem:[#allocation16_spill]] %s2804_s8  ;;  %s39_s11 = ssub.s32 %s2173_s28, %s2804_s8 }
  0x15   : > { %p2302_p3 = por %p51_p2, %p50_p1  ;;  %p36_p4 = scmp.ge.s32.totalorder %s2806_s9, 2 }
  0x16   : > { %p67_p5 = scmp.eq.s32.totalorder %s39_s11, 0  ;;  %s69_s13 = sadd.s32 1, %s2153_s23 }
  0x17   : > { %s2755_s12 = scalar_select %p2302_p3, 1, 0 }
  0x18   : > { %p76_p6 = scmp.ne.s32.totalorder %s2153_s23, %s2149_s22  ;;  %s2808_s9 = smov (%p36_p4, %s2806_s9), 0 }
  0x19   : > { %2756 = sst [smem:[#allocation17_spill]] %s2808_s9  ;;  %s38_s15 = ssub.s32 %s2177_s29, %s2808_s9 }
  0x1a   : > { %s2312_s14 = scalar_select %p67_p5, %s2153_s23, %s69_s13  }
  0x1b   : > { %p2316_p7 = por %p76_p6, %p51_p2  ;;  %s40_s17 = sor.u32 %s39_s11, %s38_s15 }
  0x1c   : > { %2757 = sst [smem:[#allocation18_spill]] %s2312_s14  ;;  %p82_p8 = scmp.ne.s32.totalorder %s2149_s22, %s2145_s21 }
  0x1d   : > { %s2758_s16 = scalar_select %p2316_p7, 1, 0 }
  0x1e   : > { %p41_p9 = scmp.eq.s32.totalorder %s40_s17, 0  ;;  %p2324_p10 = scmp.eq.s32.totalorder %s1554_s6, 0 }
  0x1f   : > { %p161_p11 = scmp.eq.s32.totalorder %s38_s15, 0  ;;  %s163_s8 = sadd.s32 1, %s2141_s20 }
  0x20   : > { %s2759_s7 = scalar_select %p2324_p10, 1, 0 }
  0x21   : > { %s2330_s13 = scalar_select %p41_p9, %s2161_s25, %s43_s10  }
  0x22   : > { %p2334_p12 = por %p2324_p10, %p82_p8  ;;  %p173_p13 = scmp.ne.s32.totalorder %s2141_s20, %s2137_s19 }
  0x23   : > { %2760 = sst [smem:[#allocation19_spill]] %s2330_s13  ;;  %p174_p0 = scmp.eq.s32.totalorder %s1554_s6, 3 }
  0x24   : > { %s2761_s9 = scalar_select %p2334_p12, 1, 0 }
  0x25   : > { %s2341_s11 = scalar_select %p161_p11, %s2141_s20, %s163_s8  }
  0x26   : > { %p179_p1 = scmp.ne.s32.totalorder %s2137_s19, %s2133_s18  ;;  %s2763_s21 = sadd.s32 4294967294, %s2181_s30  }
  0x27   : > { %2762 = sst [smem:[#allocation20_spill]] %s2341_s11  ;;  %p180_p2 = scmp.eq.s32.totalorder %s2763_s21, 3 }
  0x28   : > { %p1556_p4 = scmp.ge.s32.totalorder %s2181_s30, 1  ;;  %p2350_p5 = por %p174_p0, %p173_p13 }
  0x29   : > { %p187_p6 = scmp.lt.s32.totalorder %s2181_s30, 5  ;;  %p2355_p9 = por %p180_p2, %p179_p1 }
  0x2a   : > { %s2764_s15 = scalar_select %p2350_p5, 1, 0 }
  0x2b   : > { %s2766_s10 = scalar_select %p2355_p9, 1, 0 }
  0x2c   : > { %2765 = sst [smem:[#allocation21_spill]] %s2764_s15  ;;  %p2359_p8 = pnand %p1556_p4, %p187_p6 }
  0x2d   : > { %2767 = sst [smem:[#allocation22_spill]] %s2766_s10  ;;  %s2183_s8 = smov [#allocation7]  }
  0x2e   : > { %s2768_s17 = scalar_select %p2359_p8, 1, 0 }
  0x2f   : > { %s199_s6 = sshll.u32 %s2183_s8, 4  ;;  %p1833_p11 = pneg %p2359_p8  ;;  %s200_s6 = int_to_ptr.vmem [resolvable:$true] %s199_s6 }
  0x30   : > { %s1983_s11 = scalar_lea.hbm %s2731_s2, 1024 }
  0x31   : > { %p2367_p13 = pnand %p1833_p11, %p2324_p10  ;;  %p1984_p0 = scmp.ne.s32.totalorder %s2731_s2, %s1983_s11 }
  0x32   : > { %p1990_p6 = scmp.lt.u32.totalorder %s1983_s11, %s2731_s2 }
  0x33   : > { %p1985_p1 = pneg %p2367_p13 }
  0x35   : > { %p1986_p2 = pnand %p1985_p1, %p1984_p0 }
  0x37   : > { %p1987_p4 = pneg %p1986_p2 }
  0x39   : > { %p1992_p11 = pnand %p1990_p6, %p1987_p4 }
  0x3b   : > { %1995 = shalt.err (!%p1992_p11)
}
  0x3c   : > { %s1996_s5 = scalar_lea.vmem %s200_s6, 1024  ;;  %p2004_p12 = scmp.lt.s32.totalorder %s200_s6, %s200_s6 }
  0x3d   : > { %p1997_p9 = scmp.ne.s32.totalorder %s200_s6, %s1996_s5  ;;  %p2005_p8 = scmp.lt.s32.totalorder %s1996_s5, %s1996_s5 }
  0x3f   : > { %p1999_p5 = pnand %p1997_p9, %p1985_p1  ;;  %p2006_p7 = por %p2005_p8, %p2004_p12 }
  0x41   : > { %p2000_p10 = pneg %p1999_p5 }
  0x43   : > { %p2007_p3 = pnand %p2006_p7, %p2000_p10 }
  0x45   : > { %2010 = shalt.err (!%p2007_p3)
}
  0x46   : > { %s2184_s20 = smov 64   ;;  %s2185_s14 = smov 4  }
  0x47   : > { %1836 = dma.hbm_to_vmem [thread:$0]  (!%p2367_p13), %s2731_s2, 1024, %s200_s6, [#allocation8], %s2184_s20, %s2184_s20, %s2185_s14  }
  0x48   : > { %p1558_p0 = scmp.ge.s32.totalorder %s2181_s30, 4 }
  0x49   : > { %p2770_p2 = scmp.ne.s32.totalorder (!%p1558_p0), %s2755_s12, 0 }
  0x4a   : > { %212 = sbr.rel (%p1558_p0) target bundleno = 123 (0x7b), region = 24 }
  0x51   : > { %215 = sbr.rel (!%p2770_p2) target bundleno = 96 (0x60), region = 28  ;;  %s217_s5 = sand.u32 (%p2770_p2), 1, %s2161_s25  }
  0x52   : > { %s1561_s18 = sshll.u32 (%p2770_p2), %s2173_s28, 1  ;;  %s1559_s11 = sshll.u32 (%p2770_p2), %s217_s5, 7 }
  0x53   : > { %s1606_s8 = sshll.u32 (%p2770_p2), %s2177_s29, 5  ;;  %s219_s12 = scalar_lea.vmem (%p2770_p2), [#allocation3], %s1559_s11 }
  0x54   : > { %s223_s15 = sadd.s32 (%p2770_p2), %s1606_s8, %s1561_s18 }
  0x55   : > { %s1563_s4 = sshll.u32 (%p2770_p2), %s223_s15, 3 }
  0x56   : > { %s2396_s13 = scalar_lea.vmem (%p2770_p2), %s2729_s0, %s1563_s4 }
  0x57   : > { %v238_v0 = vld [vmem:[%s2396_s13] sm:$0xff] (%p2770_p2)  ;;  %v240_v1 = vld [vmem:[%s2396_s13 + $0x8] sm:$0xff] (%p2770_p2) }
  0x58   : > { %v242_v2 = vld [vmem:[%s2396_s13 + $0x20] sm:$0xff]  ;;  %239 = vst [vmem:[%s219_s12] sm:$0xff] %v238_v0  ;;  %241 = vst [vmem:[%s219_s12 + $0x8] sm:$0xff] %v240_v1  ;;  %v244_v3 = vld [vmem:[%s2396_s13 + $0x28] sm:$0xff] }
  0x59   : > { %243 = vst [vmem:[%s219_s12 + $0x10] sm:$0xff] %v242_v2  ;;  %v246_v4 = vld [vmem:[%s2396_s13 + $0x40] sm:$0xff]  ;;  %v248_v5 = vld [vmem:[%s2396_s13 + $0x48] sm:$0xff]  ;;  %245 = vst [vmem:[%s219_s12 + $0x18] sm:$0xff] %v244_v3 }
  0x5a   : > { %247 = vst [vmem:[%s219_s12 + $0x20] sm:$0xff] %v246_v4  ;;  %249 = vst [vmem:[%s219_s12 + $0x28] sm:$0xff] %v248_v5  ;;  %v250_v6 = vld [vmem:[%s2396_s13 + $0x60] sm:$0xff]  ;;  %v252_v7 = vld [vmem:[%s2396_s13 + $0x68] sm:$0xff] }
  0x5b   : > { %v254_v8 = vld [vmem:[%s2396_s13 + $0x80] sm:$0xff]  ;;  %251 = vst [vmem:[%s219_s12 + $0x30] sm:$0xff] %v250_v6  ;;  %253 = vst [vmem:[%s219_s12 + $0x38] sm:$0xff] %v252_v7  ;;  %v256_v9 = vld [vmem:[%s2396_s13 + $0x88] sm:$0xff] }
  0x5c   : > { %255 = vst [vmem:[%s219_s12 + $0x40] sm:$0xff] %v254_v8  ;;  %v258_v10 = vld [vmem:[%s2396_s13 + $0xa0] sm:$0xff]  ;;  %v260_v11 = vld [vmem:[%s2396_s13 + $0xa8] sm:$0xff]  ;;  %257 = vst [vmem:[%s219_s12 + $0x48] sm:$0xff] %v256_v9 }
  0x5d   : > { %259 = vst [vmem:[%s219_s12 + $0x50] sm:$0xff] %v258_v10  ;;  %261 = vst [vmem:[%s219_s12 + $0x58] sm:$0xff] %v260_v11  ;;  %v262_v12 = vld [vmem:[%s2396_s13 + $0xc0] sm:$0xff]  ;;  %v264_v13 = vld [vmem:[%s2396_s13 + $0xc8] sm:$0xff] }
  0x5e   : > { %v266_v14 = vld [vmem:[%s2396_s13 + $0xe0] sm:$0xff]  ;;  %263 = vst [vmem:[%s219_s12 + $0x60] sm:$0xff] %v262_v12  ;;  %265 = vst [vmem:[%s219_s12 + $0x68] sm:$0xff] %v264_v13  ;;  %v268_v15 = vld [vmem:[%s2396_s13 + $0xe8] sm:$0xff] }
  0x5f   : > { %267 = vst [vmem:[%s219_s12 + $0x70] sm:$0xff] %v266_v14  ;;  %269 = vst [vmem:[%s219_s12 + $0x78] sm:$0xff] %v268_v15 }
  0x60 PF: > { %s276_s4 = sand.u32 1, %s2153_s23   ;;  %s1607_s26 = sshll.u32 %s2173_s28, 11 }
  0x61   : > { %s1564_s15 = sshll.u32 %s276_s4, 7  ;;  %s2419_s14 = scalar_lea.hbm %s2730_s1, %s1607_s26 }
  0x62   : > { %s280_s10 = scalar_lea.vmem [#allocation4], %s1564_s15  ;;  %s2423_s18 = scalar_lea.sflag [#allocation5], %s276_s4 }
  0x63   : > { %s287_s5 = sshll.u32 %s280_s10, 4  ;;  %s2011_s11 = scalar_lea.hbm %s2419_s14, 2048  ;;  %s2421_s5 = int_to_ptr.vmem [resolvable:$true] %s287_s5 }
  0x64   : > { %p2012_p3 = scmp.ne.s32.totalorder %s2419_s14, %s2011_s11  ;;  %p2771_p7 = scmp.ne.s32.totalorder %s2758_s16, 0 }
  0x65   : > { %s2015_s13 = scalar_lea.hbm %s2730_s1, 4096  ;;  %p2016_p5 = scmp.lt.u32.totalorder %s2419_s14, %s2730_s1 }
  0x66   : > { %p2013_p10 = pnand %p2012_p3, %p2771_p7  ;;  %p2017_p9 = scmp.lt.u32.totalorder %s2015_s13, %s2011_s11 }
  0x67   : > { %p2019_p13 = scmp.lt.u32.totalorder %s2011_s11, %s2419_s14 }
  0x68   : > { %p2014_p12 = pneg %p2013_p10  ;;  %p2018_p8 = por %p2017_p9, %p2016_p5 }
  0x6a   : > { %p2020_p1 = por %p2019_p13, %p2018_p8 }
  0x6c   : > { %p2021_p4 = pnand %p2020_p1, %p2014_p12 }
  0x6e   : > { %2024 = shalt.err (!%p2021_p4)
}
  0x6f   : > { %s2025_s4 = scalar_lea.vmem %s2421_s5, 2048  ;;  %s2186_s15 = smov [#allocation4]  }
  0x70   : > { %p2026_p6 = scmp.ne.s32.totalorder %s2421_s5, %s2025_s4  ;;  %s2029_s6 = sshll.u32 %s2186_s15, 4  ;;  %s2030_s6 = int_to_ptr.vmem [resolvable:$false] %s2029_s6 }
  0x71   : > { %s2031_s20 = scalar_lea.vmem %s2030_s6, 4096  ;;  %p2032_p2 = scmp.lt.s32.totalorder %s2421_s5, %s2030_s6 }
  0x72   : > { %p2027_p11 = pnand %p2026_p6, %p2771_p7  ;;  %p2033_p3 = scmp.lt.s32.totalorder %s2031_s20, %s2025_s4 }
  0x74   : > { %p2028_p0 = pneg %p2027_p11  ;;  %p2034_p10 = por %p2033_p3, %p2032_p2 }
  0x76   : > { %p2035_p5 = pnand %p2034_p10, %p2028_p0 }
  0x78   : > { %2038 = shalt.err (!%p2035_p5)
}
  0x79   : > { %s2187_s10 = smov 64   ;;  %s2188_s11 = smov 4  }
  0x7a   : > { %1827 = dma.hbm_to_vmem [thread:$0]  (%p2771_p7), %s2419_s14, 2048, %s2421_s5, %s2423_s18, %s2187_s10, %s2187_s10, %s2188_s11  }
  0x7b PF: > { %p2772_p12 = scmp.ne.s32.totalorder %s2768_s17, 0 }
  0x7c   : > { %s311_s8 = sand.u32 (!%p2772_p12), 1, %s2157_s24   ;;  %s317_s21 = sand.u32 (!%p2772_p12), 1, %s2149_s22  }
  0x7d   : > { %308 = sbr.rel (%p2772_p12) target bundleno = 750 (0x2ee), region = 59  ;;  %s1568_s13 = sshll.u32 (!%p2772_p12), %s311_s8, 7 }
  0x7e   : > { %s1569_s12 = sshll.u32 (!%p2772_p12), %s317_s21, 7  ;;  %s2451_s26 = scalar_lea.vmem (!%p2772_p12), [#allocation3], %s1568_s13 }
  0x7f   : > { %s318_s4 = scalar_lea.sflag (!%p2772_p12), [#allocation5], %s317_s21  ;;  %s2453_s15 = scalar_lea.vmem (!%p2772_p12), [#allocation4], %s1569_s12 }
  0x80   : > { %p2773_p9 = scmp.ne.s32.totalorder (!%p2772_p12), %s2761_s9, 0 }
  0x84   : > { %2120 = dma.done.wait (%p2773_p9), %s318_s4, 2048  }
  0x85   : > { %2122 = vsyncadd (%p2773_p9), %s318_s4, 4294965248  ;;  %p2774_p7 = scmp.ne.s32.totalorder %s2759_s7, 0 }
  0x87   : > { %2124 = dma.done.wait (%p2774_p7), [#allocation8], 1024  }
  0x88   : > { %2126 = vsyncadd (%p2774_p7), [#allocation8], 4294966272  ;;  %s358_s24 = sand.u32 1, %s2137_s19   ;;  %s1572_s16 = sshll.u32 %s2169_s27, 5 }
  0x89   : > { %s1571_s17 = sshll.u32 %s358_s24, 8  ;;  %p365_p8 = scmp.lt.s32.totalorder %s1572_s16, 63 }
  0x8a   : > { %s2472_s6 = scalar_lea.vmem [#allocation9], %s1571_s17  ;;  %s2775_s20 = sld [smem:[#allocation15_spill]] }
  0x8b   : > { %s2810_s16 = smov (!%p365_p8, %s1572_s16), 63 }
  0x8c   : > { %s1573_s14 = sshll.u32 %s2810_s16, 3 }
  0x8d   : > { %s2470_s9 = scalar_lea.vmem %s2732_s3, %s1573_s14 }
  0x90   : > { %p1574_p13 = scmp.ne.s32.totalorder %s2775_s20, 0 }
  0x91   : > { %v2189_v16 = vmov (!%p1574_p13), 0.0  }
  0x92   : > { %375 = sbr.rel (%p1574_p13) target bundleno = 162 (0xa2), region = 75  ;;  %376 = vst [vmem:[#allocation2] sm:$0xff] (!%p1574_p13), %v2189_v16  ;;  %377 = vst [vmem:[#allocation2 + $0x8] sm:$0xff] (!%p1574_p13), %v2189_v16 }
  0x93   : > { %378 = vst [vmem:[#allocation2 + $0x10] sm:$0xff] (!%p1574_p13), %v2189_v16  ;;  %379 = vst [vmem:[#allocation2 + $0x18] sm:$0xff] (!%p1574_p13), %v2189_v16 }
  0x94   : > { %380 = vst [vmem:[#allocation2 + $0x20] sm:$0xff] (!%p1574_p13), %v2189_v16  ;;  %381 = vst [vmem:[#allocation2 + $0x28] sm:$0xff] (!%p1574_p13), %v2189_v16 }
  0x95   : > { %382 = vst [vmem:[#allocation2 + $0x30] sm:$0xff] (!%p1574_p13), %v2189_v16  ;;  %383 = vst [vmem:[#allocation2 + $0x38] sm:$0xff] (!%p1574_p13), %v2189_v16 }
  0x96   : > { %384 = vst [vmem:[#allocation2 + $0x40] sm:$0xff] (!%p1574_p13), %v2189_v16  ;;  %385 = vst [vmem:[#allocation2 + $0x48] sm:$0xff] (!%p1574_p13), %v2189_v16 }
  0x97   : > { %386 = vst [vmem:[#allocation2 + $0x50] sm:$0xff] (!%p1574_p13), %v2189_v16  ;;  %387 = vst [vmem:[#allocation2 + $0x58] sm:$0xff] (!%p1574_p13), %v2189_v16 }
  0x98   : > { %388 = vst [vmem:[#allocation2 + $0x60] sm:$0xff] (!%p1574_p13), %v2189_v16  ;;  %389 = vst [vmem:[#allocation2 + $0x68] sm:$0xff] (!%p1574_p13), %v2189_v16 }
  0x99   : > { %390 = vst [vmem:[#allocation2 + $0x70] sm:$0xff] %v2189_v16  ;;  %391 = vst [vmem:[#allocation2 + $0x78] sm:$0xff] %v2189_v16 }
  0x9a   : > { %392 = vst [vmem:[#allocation2 + $0x80] sm:$0xff] %v2189_v16  ;;  %393 = vst [vmem:[#allocation2 + $0x88] sm:$0xff] %v2189_v16 }
  0x9b   : > { %394 = vst [vmem:[#allocation2 + $0x90] sm:$0xff] %v2189_v16  ;;  %395 = vst [vmem:[#allocation2 + $0x98] sm:$0xff] %v2189_v16 }
  0x9c   : > { %396 = vst [vmem:[#allocation2 + $0xa0] sm:$0xff] %v2189_v16  ;;  %397 = vst [vmem:[#allocation2 + $0xa8] sm:$0xff] %v2189_v16 }
  0x9d   : > { %398 = vst [vmem:[#allocation2 + $0xb0] sm:$0xff] %v2189_v16  ;;  %399 = vst [vmem:[#allocation2 + $0xb8] sm:$0xff] %v2189_v16 }
  0x9e   : > { %400 = vst [vmem:[#allocation2 + $0xc0] sm:$0xff] %v2189_v16  ;;  %401 = vst [vmem:[#allocation2 + $0xc8] sm:$0xff] %v2189_v16 }
  0x9f   : > { %402 = vst [vmem:[#allocation2 + $0xd0] sm:$0xff] %v2189_v16  ;;  %403 = vst [vmem:[#allocation2 + $0xd8] sm:$0xff] %v2189_v16 }
  0xa0   : > { %404 = vst [vmem:[#allocation2 + $0xe0] sm:$0xff] %v2189_v16  ;;  %405 = vst [vmem:[#allocation2 + $0xe8] sm:$0xff] %v2189_v16 }
  0xa1   : > { %406 = vst [vmem:[#allocation2 + $0xf0] sm:$0xff] %v2189_v16  ;;  %407 = vst [vmem:[#allocation2 + $0xf8] sm:$0xff] %v2189_v16 }
  0xa2 PF: > { %v1957_v17 = vld [vmem:[%s2453_s15 + $0x40] sm:$0xff]   ;;  %v1959_v19 = vld [vmem:[%s2453_s15 + $0x48] sm:$0xff]   ;;  %v1961_v21 = vld [vmem:[%s2453_s15 + $0x50] sm:$0xff]   ;;  %s2776_s7 = sld [smem:[#allocation15_spill]] }
  0xa3   : > { %v1958_v18 = vld [vmem:[%s2453_s15] sm:$0xff]   ;;  %1609 = vmatprep.subr.bf16.mxu0 %v1957_v17  ;;  %1793 = vmatprep.subr.bf16.mxu1 %v1957_v17  ;;  %v1960_v20 = vld [vmem:[%s2453_s15 + $0x8] sm:$0xff]   ;;  %v1962_v22 = vld [vmem:[%s2453_s15 + $0x10] sm:$0xff]  }
  0xa4   : > { %1610 = vmatpush3.bf16.msra.mxu0 %v1958_v18  ;;  %1801 = vmatpush3.bf16.msra.mxu1 %v1958_v18  ;;  %v1963_v23 = vld [vmem:[%s2453_s15 + $0x58] sm:$0xff]   ;;  %v1965_v25 = vld [vmem:[%s2453_s15 + $0x60] sm:$0xff]   ;;  %v1967_v27 = vld [vmem:[%s2453_s15 + $0x68] sm:$0xff]  }
  0xa5   : > { %1611 = vmatprep.subr.bf16.mxu0 %v1959_v19  ;;  %1794 = vmatprep.subr.bf16.mxu1 %v1959_v19  ;;  %v1964_v24 = vld [vmem:[%s2453_s15 + $0x18] sm:$0xff]   ;;  %v1966_v26 = vld [vmem:[%s2453_s15 + $0x20] sm:$0xff]   ;;  %v409_v28 = vld [vmem:[%s2451_s26 + $0x8] sm:$0xff] }
  0xa6   : > { %v417_v29 = vld [vmem:[%s2451_s26 + $0x48] sm:$0xff]  ;;  %v425_v30 = vunpack.c.l.s8.bf16 %v409_v28  ;;  %v1969_v33 = vld [vmem:[%s2453_s15 + $0x70] sm:$0xff]   ;;  %v1971_v35 = vld [vmem:[%s2453_s15 + $0x78] sm:$0xff]   ;;  %v427_v41 = vunpack.c.h.s8.bf16 %v409_v28 }
  0xa7   : > { %v441_v31 = vunpack.c.l.s8.bf16 %v417_v29  ;;  %v1968_v32 = vld [vmem:[%s2453_s15 + $0x28] sm:$0xff]   ;;  %v1970_v34 = vld [vmem:[%s2453_s15 + $0x30] sm:$0xff]   ;;  %v1972_v36 = vld [vmem:[%s2453_s15 + $0x38] sm:$0xff]   ;;  %v443_v42 = vunpack.c.h.s8.bf16 %v417_v29 }
  0xa8   : > { %1612 = vmatpush3.bf16.msra.mxu0 %v1960_v20  ;;  %1802 = vmatpush3.bf16.msra.mxu1 %v1960_v20  ;;  %v408_v37 = vld [vmem:[%s2451_s26] sm:$0xff]  ;;  %v411_v43 = vld [vmem:[%s2451_s26 + $0x18] sm:$0xff]  ;;  %v410_v49 = vld [vmem:[%s2451_s26 + $0x10] sm:$0xff]  ;;  %p1591_p1 = scmp.ne.s32.totalorder %s2776_s7, 1 }
  0xa9   : > { %1613 = vmatprep.subr.bf16.mxu0 %v1961_v21  ;;  %1795 = vmatprep.subr.bf16.mxu1 %v1961_v21  ;;  %v416_v38 = vld [vmem:[%s2451_s26 + $0x40] sm:$0xff]  ;;  %v424_v39 = vunpack.c.l.s8.bf16 %v408_v37  ;;  %v419_v44 = vld [vmem:[%s2451_s26 + $0x58] sm:$0xff]  ;;  %v426_v45 = vunpack.c.h.s8.bf16 %v408_v37  ;;  %v429_v47 = vunpack.c.l.s8.bf16 %v411_v43  ;;  %v418_v50 = vld [vmem:[%s2451_s26 + $0x50] sm:$0xff]  ;;  %v428_v51 = vunpack.c.l.s8.bf16 %v410_v49  ;;  %s2777_s8 = sld [smem:[#allocation23_spill]] (!%p1591_p1) }
  0xaa   : > { %648 = vmatprep.mubr.bf16.mxu0 %v425_v30  ;;  %712 = vmatprep.mubr.bf16.mxu1 %v441_v31  ;;  %v440_v40 = vunpack.c.l.s8.bf16 %v416_v38  ;;  %v442_v46 = vunpack.c.h.s8.bf16 %v416_v38  ;;  %v445_v48 = vunpack.c.l.s8.bf16 %v419_v44  ;;  %v444_v52 = vunpack.c.l.s8.bf16 %v418_v50  ;;  %v413_v55 = vld [vmem:[%s2451_s26 + $0x28] sm:$0xff]  ;;  %v412_v61 = vld [vmem:[%s2451_s26 + $0x20] sm:$0xff]  ;;  %v415_v3 = vld [vmem:[%s2451_s26 + $0x38] sm:$0xff] }
  0xab   : > { %v431_v53 = vunpack.c.h.s8.bf16 %v411_v43  ;;  %v447_v54 = vunpack.c.h.s8.bf16 %v419_v44  ;;  %v421_v56 = vld [vmem:[%s2451_s26 + $0x68] sm:$0xff]  ;;  %v430_v57 = vunpack.c.h.s8.bf16 %v410_v49  ;;  %v446_v58 = vunpack.c.h.s8.bf16 %v418_v50  ;;  %v420_v62 = vld [vmem:[%s2451_s26 + $0x60] sm:$0xff]  ;;  %v423_v4 = vld [vmem:[%s2451_s26 + $0x78] sm:$0xff] }
  0xac   : > { %1614 = vmatpush3.bf16.msra.mxu0 %v1962_v22  ;;  %1803 = vmatpush3.bf16.msra.mxu1 %v1962_v22  ;;  %v433_v59 = vunpack.c.l.s8.bf16 %v413_v55  ;;  %v449_v60 = vunpack.c.l.s8.bf16 %v421_v56  ;;  %v432_v63 = vunpack.c.l.s8.bf16 %v412_v61  ;;  %v448_v0 = vunpack.c.l.s8.bf16 %v420_v62  ;;  %v414_v9 = vld [vmem:[%s2451_s26 + $0x30] sm:$0xff]  ;;  %v456_v19 = vld [vmem:[#allocation2] sm:$0xff]  ;;  %v473_v29 = vld [vmem:[#allocation2 + $0x88] sm:$0xff] }
  0xad   : > { %1615 = vmatprep.subr.bf16.mxu0 %v1963_v23  ;;  %1796 = vmatprep.subr.bf16.mxu1 %v1963_v23  ;;  %v435_v1 = vunpack.c.h.s8.bf16 %v413_v55  ;;  %v451_v2 = vunpack.c.h.s8.bf16 %v421_v56  ;;  %v434_v5 = vunpack.c.h.s8.bf16 %v412_v61  ;;  %v450_v6 = vunpack.c.h.s8.bf16 %v420_v62  ;;  %v422_v10 = vld [vmem:[%s2451_s26 + $0x70] sm:$0xff]  ;;  %v472_v21 = vld [vmem:[#allocation2 + $0x80] sm:$0xff]  ;;  %v475_v49 = vld [vmem:[#allocation2 + $0x98] sm:$0xff] }
  0xae   : > { %v437_v7 = vunpack.c.l.s8.bf16 %v415_v3  ;;  %v453_v8 = vunpack.c.l.s8.bf16 %v423_v4  ;;  %v436_v11 = vunpack.c.l.s8.bf16 %v414_v9  ;;  %v452_v12 = vunpack.c.l.s8.bf16 %v422_v10  ;;  %v476_v61 = vld [vmem:[#allocation2 + $0xa0] sm:$0xff] }
  0xaf   : > { %v439_v13 = vunpack.c.h.s8.bf16 %v415_v3  ;;  %v455_v14 = vunpack.c.h.s8.bf16 %v423_v4  ;;  %v438_v15 = vunpack.c.h.s8.bf16 %v414_v9  ;;  %v454_v16 = vunpack.c.h.s8.bf16 %v422_v10  ;;  %v461_v3 = vld [vmem:[#allocation2 + $0x28] sm:$0xff] }
  0xb0   : > { %1616 = vmatpush3.bf16.msra.mxu0 %v1964_v24  ;;  %1804 = vmatpush3.bf16.msra.mxu1 %v1964_v24 }
  0xb1   : > { %1617 = vmatprep.subr.bf16.mxu0 %v1965_v25  ;;  %1797 = vmatprep.subr.bf16.mxu1 %v1965_v25 }
  0xb4   : > { %1618 = vmatpush3.bf16.msra.mxu0 %v1966_v26  ;;  %1805 = vmatpush3.bf16.msra.mxu1 %v1966_v26 }
  0xb5   : > { %1619 = vmatprep.subr.bf16.mxu0 %v1967_v27  ;;  %1798 = vmatprep.subr.bf16.mxu1 %v1967_v27  ;;  %v457_v27 = vld [vmem:[#allocation2 + $0x8] sm:$0xff] }
  0xb8   : > { %1620 = vmatpush3.bf16.msra.mxu0 %v1968_v32  ;;  %1806 = vmatpush3.bf16.msra.mxu1 %v1968_v32 }
  0xb9   : > { %1621 = vmatprep.subr.bf16.mxu0 %v1969_v33  ;;  %1799 = vmatprep.subr.bf16.mxu1 %v1969_v33 }
  0xbc   : > { %1622 = vmatpush3.bf16.msra.mxu0 %v1970_v34  ;;  %1807 = vmatpush3.bf16.msra.mxu1 %v1970_v34 }
  0xbd   : > { %1623 = vmatprep.subr.bf16.mxu0 %v1971_v35  ;;  %1800 = vmatprep.subr.bf16.mxu1 %v1971_v35 }
  0xc0   : > { %1624 = vmatpush3.bf16.msra.mxu0 %v1972_v36  ;;  %1808 = vmatpush3.bf16.msra.mxu1 %v1972_v36 }
  0xc3   : > { %649 = vmatmul.mubr.bf16.vlgmr.msra.gmra.mrb[0].mxu0 %v424_v39  ;;  %713 = vmatmul.mubr.bf16.vlgmr.msra.gmra.mrb[0].mxu1 %v440_v40  ;;  %v458_v39 = vld [vmem:[#allocation2 + $0x10] sm:$0xff] }
  0xc4   : > { %656 = vmatprep.mubr.bf16.mxu0 %v427_v41  ;;  %720 = vmatprep.mubr.bf16.mxu1 %v443_v42  ;;  %v474_v41 = vld [vmem:[#allocation2 + $0x90] sm:$0xff] }
  0xcb   : > { %657 = vmatmul.mubr.bf16.gmra.mrb[4].mxu0 %v426_v45  ;;  %721 = vmatmul.mubr.bf16.gmra.mrb[4].mxu1 %v442_v46 }
  0xcc   : > { %664 = vmatprep.mubr.bf16.mxu0 %v429_v47  ;;  %728 = vmatprep.mubr.bf16.mxu1 %v445_v48  ;;  %v459_v47 = vld [vmem:[#allocation2 + $0x18] sm:$0xff] }
  0xd3   : > { %665 = vmatmul.mubr.bf16.gmra.mrb[8].mxu0 %v428_v51  ;;  %729 = vmatmul.mubr.bf16.gmra.mrb[8].mxu1 %v444_v52 }
  0xd4   : > { %672 = vmatprep.mubr.bf16.mxu0 %v431_v53  ;;  %736 = vmatprep.mubr.bf16.mxu1 %v447_v54 }
  0xdb   : > { %673 = vmatmul.mubr.bf16.gmra.mrb[12].mxu0 %v430_v57  ;;  %737 = vmatmul.mubr.bf16.gmra.mrb[12].mxu1 %v446_v58 }
  0xdc   : > { %680 = vmatprep.mubr.bf16.mxu0 %v433_v59  ;;  %744 = vmatprep.mubr.bf16.mxu1 %v449_v60  ;;  %v460_v59 = vld [vmem:[#allocation2 + $0x20] sm:$0xff] }
  0xe3   : > { %681 = vmatmul.mubr.bf16.gmra.mrb[16].mxu0 %v432_v63  ;;  %745 = vmatmul.mubr.bf16.gmra.mrb[16].mxu1 %v448_v0 }
  0xe4   : > { %688 = vmatprep.mubr.bf16.mxu0 %v435_v1  ;;  %752 = vmatprep.mubr.bf16.mxu1 %v451_v2 }
  0xeb   : > { %689 = vmatmul.mubr.bf16.gmra.mrb[20].mxu0 %v434_v5  ;;  %753 = vmatmul.mubr.bf16.gmra.mrb[20].mxu1 %v450_v6  ;;  %v477_v5 = vld [vmem:[#allocation2 + $0xa8] sm:$0xff] }
  0xec   : > { %696 = vmatprep.mubr.bf16.mxu0 %v437_v7  ;;  %760 = vmatprep.mubr.bf16.mxu1 %v453_v8 }
  0xf3   : > { %697 = vmatmul.mubr.bf16.gmra.mrb[24].mxu0 %v436_v11  ;;  %761 = vmatmul.mubr.bf16.gmra.mrb[24].mxu1 %v452_v12 }
  0xf4   : > { %704 = vmatprep.mubr.bf16.mxu0 %v439_v13  ;;  %768 = vmatprep.mubr.bf16.mxu1 %v455_v14 }
  0xfb   : > { %705 = vmatmul.mubr.bf16.gmra.mrb[28].mxu0 %v438_v15  ;;  %769 = vmatmul.mubr.bf16.gmra.mrb[28].mxu1 %v454_v16  ;;  %v462_v15 = vld [vmem:[#allocation2 + $0x30] sm:$0xff] }
 0x196   : > { %v1625_v17 = vpop.f32.mrb[0].mxu0  ;;  %v1673_v18 = vpop.f32.mrb[0].mxu1 }
 0x197   : > { %v1626_v20 = vpop.f32.mrb[1].mxu0  ;;  %v1674_v22 = vpop.f32.mrb[1].mxu1 }
 0x198   : > { %v1627_v23 = vadd.f32 %v1626_v20, %v1625_v17  ;;  %v1675_v24 = vadd.f32 %v1674_v22, %v1673_v18  ;;  %v1628_v25 = vpop.f32.mrb[2].mxu0  ;;  %v1676_v26 = vpop.f32.mrb[2].mxu1  ;;  %v478_v17 = vld [vmem:[#allocation2 + $0xb0] sm:$0xff] }
 0x199   : > { %v1629_v28 = vpop.f32.mrb[3].mxu0  ;;  %v1677_v30 = vpop.f32.mrb[3].mxu1 }
 0x19a   : > { %v777_v31 = vadd.f32 %v1627_v23, %v456_v19  ;;  %v793_v32 = vadd.f32 %v1675_v24, %v472_v21  ;;  %v1630_v33 = vadd.f32 %v1629_v28, %v1628_v25  ;;  %v1678_v34 = vadd.f32 %v1677_v30, %v1676_v26  ;;  %v463_v23 = vld [vmem:[#allocation2 + $0x38] sm:$0xff] }
 0x19b   : > { %v479_v25 = vld [vmem:[#allocation2 + $0xb8] sm:$0xff] }
 0x19c   : > { %809 = vst [vmem:[#allocation2] sm:$0xff] %v777_v31  ;;  %825 = vst [vmem:[#allocation2 + $0x80] sm:$0xff] %v793_v32  ;;  %v778_v35 = vadd.f32 %v1630_v33, %v457_v27  ;;  %v794_v36 = vadd.f32 %v1678_v34, %v473_v29 }
 0x19e   : > { %810 = vst [vmem:[#allocation2 + $0x8] sm:$0xff] %v778_v35  ;;  %826 = vst [vmem:[#allocation2 + $0x88] sm:$0xff] %v794_v36  ;;  %v1631_v37 = vpop.f32.mrb[4].mxu0  ;;  %v1679_v38 = vpop.f32.mrb[4].mxu1  ;;  %v464_v35 = vld [vmem:[#allocation2 + $0x40] sm:$0xff] }
 0x19f   : > { %v1632_v40 = vpop.f32.mrb[5].mxu0  ;;  %v1680_v42 = vpop.f32.mrb[5].mxu1 }
 0x1a0   : > { %v1633_v43 = vadd.f32 %v1632_v40, %v1631_v37  ;;  %v1681_v44 = vadd.f32 %v1680_v42, %v1679_v38  ;;  %v1634_v45 = vpop.f32.mrb[6].mxu0  ;;  %v1682_v46 = vpop.f32.mrb[6].mxu1  ;;  %v480_v37 = vld [vmem:[#allocation2 + $0xc0] sm:$0xff] }
 0x1a1   : > { %v1635_v48 = vpop.f32.mrb[7].mxu0  ;;  %v1683_v50 = vpop.f32.mrb[7].mxu1 }
 0x1a2   : > { %v779_v51 = vadd.f32 %v1633_v43, %v458_v39  ;;  %v795_v52 = vadd.f32 %v1681_v44, %v474_v41  ;;  %v1636_v53 = vadd.f32 %v1635_v48, %v1634_v45  ;;  %v1684_v54 = vadd.f32 %v1683_v50, %v1682_v46  ;;  %v465_v43 = vld [vmem:[#allocation2 + $0x48] sm:$0xff] }
 0x1a3   : > { %v481_v45 = vld [vmem:[#allocation2 + $0xc8] sm:$0xff] }
 0x1a4   : > { %811 = vst [vmem:[#allocation2 + $0x10] sm:$0xff] %v779_v51  ;;  %827 = vst [vmem:[#allocation2 + $0x90] sm:$0xff] %v795_v52  ;;  %v780_v55 = vadd.f32 %v1636_v53, %v459_v47  ;;  %v796_v56 = vadd.f32 %v1684_v54, %v475_v49 }
 0x1a6   : > { %812 = vst [vmem:[#allocation2 + $0x18] sm:$0xff] %v780_v55  ;;  %828 = vst [vmem:[#allocation2 + $0x98] sm:$0xff] %v796_v56  ;;  %v1637_v57 = vpop.f32.mrb[8].mxu0  ;;  %v1685_v58 = vpop.f32.mrb[8].mxu1  ;;  %v466_v55 = vld [vmem:[#allocation2 + $0x50] sm:$0xff] }
 0x1a7   : > { %v1638_v60 = vpop.f32.mrb[9].mxu0  ;;  %v1686_v62 = vpop.f32.mrb[9].mxu1 }
 0x1a8   : > { %v1639_v63 = vadd.f32 %v1638_v60, %v1637_v57  ;;  %v1687_v0 = vadd.f32 %v1686_v62, %v1685_v58  ;;  %v1640_v1 = vpop.f32.mrb[10].mxu0  ;;  %v1688_v2 = vpop.f32.mrb[10].mxu1  ;;  %v482_v57 = vld [vmem:[#allocation2 + $0xd0] sm:$0xff] }
 0x1a9   : > { %v1641_v4 = vpop.f32.mrb[11].mxu0  ;;  %v1689_v6 = vpop.f32.mrb[11].mxu1 }
 0x1aa   : > { %v781_v7 = vadd.f32 %v1639_v63, %v460_v59  ;;  %v797_v8 = vadd.f32 %v1687_v0, %v476_v61  ;;  %v1642_v9 = vadd.f32 %v1641_v4, %v1640_v1  ;;  %v1690_v10 = vadd.f32 %v1689_v6, %v1688_v2  ;;  %v467_v63 = vld [vmem:[#allocation2 + $0x58] sm:$0xff] }
 0x1ab   : > { %v483_v1 = vld [vmem:[#allocation2 + $0xd8] sm:$0xff] }
 0x1ac   : > { %813 = vst [vmem:[#allocation2 + $0x20] sm:$0xff] %v781_v7  ;;  %829 = vst [vmem:[#allocation2 + $0xa0] sm:$0xff] %v797_v8  ;;  %v782_v11 = vadd.f32 %v1642_v9, %v461_v3  ;;  %v798_v12 = vadd.f32 %v1690_v10, %v477_v5 }
 0x1ae   : > { %814 = vst [vmem:[#allocation2 + $0x28] sm:$0xff] %v782_v11  ;;  %830 = vst [vmem:[#allocation2 + $0xa8] sm:$0xff] %v798_v12  ;;  %v1643_v13 = vpop.f32.mrb[12].mxu0  ;;  %v1691_v14 = vpop.f32.mrb[12].mxu1  ;;  %v468_v11 = vld [vmem:[#allocation2 + $0x60] sm:$0xff] }
 0x1af   : > { %v1644_v16 = vpop.f32.mrb[13].mxu0  ;;  %v1692_v18 = vpop.f32.mrb[13].mxu1 }
 0x1b0   : > { %v1645_v19 = vadd.f32 %v1644_v16, %v1643_v13  ;;  %v1693_v20 = vadd.f32 %v1692_v18, %v1691_v14  ;;  %v1646_v21 = vpop.f32.mrb[14].mxu0  ;;  %v1694_v22 = vpop.f32.mrb[14].mxu1  ;;  %v484_v13 = vld [vmem:[#allocation2 + $0xe0] sm:$0xff] }
 0x1b1   : > { %v1647_v24 = vpop.f32.mrb[15].mxu0  ;;  %v1695_v26 = vpop.f32.mrb[15].mxu1 }
 0x1b2   : > { %v783_v27 = vadd.f32 %v1645_v19, %v462_v15  ;;  %v799_v28 = vadd.f32 %v1693_v20, %v478_v17  ;;  %v1648_v29 = vadd.f32 %v1647_v24, %v1646_v21  ;;  %v1696_v30 = vadd.f32 %v1695_v26, %v1694_v22  ;;  %v469_v19 = vld [vmem:[#allocation2 + $0x68] sm:$0xff] }
 0x1b3   : > { %v485_v21 = vld [vmem:[#allocation2 + $0xe8] sm:$0xff] }
 0x1b4   : > { %815 = vst [vmem:[#allocation2 + $0x30] sm:$0xff] %v783_v27  ;;  %831 = vst [vmem:[#allocation2 + $0xb0] sm:$0xff] %v799_v28  ;;  %v784_v31 = vadd.f32 %v1648_v29, %v463_v23  ;;  %v800_v32 = vadd.f32 %v1696_v30, %v479_v25 }
 0x1b6   : > { %816 = vst [vmem:[#allocation2 + $0x38] sm:$0xff] %v784_v31  ;;  %832 = vst [vmem:[#allocation2 + $0xb8] sm:$0xff] %v800_v32  ;;  %v1649_v33 = vpop.f32.mrb[16].mxu0  ;;  %v1697_v34 = vpop.f32.mrb[16].mxu1  ;;  %v470_v31 = vld [vmem:[#allocation2 + $0x70] sm:$0xff] }
 0x1b7   : > { %v1650_v36 = vpop.f32.mrb[17].mxu0  ;;  %v1698_v38 = vpop.f32.mrb[17].mxu1 }
 0x1b8   : > { %v1651_v39 = vadd.f32 %v1650_v36, %v1649_v33  ;;  %v1699_v40 = vadd.f32 %v1698_v38, %v1697_v34  ;;  %v1652_v41 = vpop.f32.mrb[18].mxu0  ;;  %v1700_v42 = vpop.f32.mrb[18].mxu1  ;;  %v486_v33 = vld [vmem:[#allocation2 + $0xf0] sm:$0xff] }
 0x1b9   : > { %v1653_v44 = vpop.f32.mrb[19].mxu0  ;;  %v1701_v46 = vpop.f32.mrb[19].mxu1 }
 0x1ba   : > { %v785_v47 = vadd.f32 %v1651_v39, %v464_v35  ;;  %v801_v48 = vadd.f32 %v1699_v40, %v480_v37  ;;  %v1654_v49 = vadd.f32 %v1653_v44, %v1652_v41  ;;  %v1702_v50 = vadd.f32 %v1701_v46, %v1700_v42  ;;  %v471_v39 = vld [vmem:[#allocation2 + $0x78] sm:$0xff] }
 0x1bb   : > { %v487_v41 = vld [vmem:[#allocation2 + $0xf8] sm:$0xff] }
 0x1bc   : > { %817 = vst [vmem:[#allocation2 + $0x40] sm:$0xff] %v785_v47  ;;  %833 = vst [vmem:[#allocation2 + $0xc0] sm:$0xff] %v801_v48  ;;  %v786_v51 = vadd.f32 %v1654_v49, %v465_v43  ;;  %v802_v52 = vadd.f32 %v1702_v50, %v481_v45  ;;  %v1975_v49 = vld [vmem:[#allocation7] sm:$0xff] (!%p1591_p1)   ;;  %v1976_v50 = vld [vmem:[#allocation7 + $0x8] sm:$0xff] (!%p1591_p1)  }
 0x1bd   : > { %1745 = vmatprep.subr.bf16.mxu0 (!%p1591_p1), %v1975_v49  ;;  %1809 = vmatprep.subr.bf16.mxu1 (!%p1591_p1), %v1975_v49 }
 0x1be   : > { %818 = vst [vmem:[#allocation2 + $0x48] sm:$0xff] %v786_v51  ;;  %834 = vst [vmem:[#allocation2 + $0xc8] sm:$0xff] %v802_v52  ;;  %v1655_v53 = vpop.f32.mrb[20].mxu0  ;;  %v1703_v54 = vpop.f32.mrb[20].mxu1  ;;  %v2190_v51 = vmov (!%p1591_p1), 0   ;;  %1746 = vmatpush3.bf16.msra.mxu0 (!%p1591_p1), %v1975_v49  ;;  %1817 = vmatpush3.bf16.msra.mxu1 (!%p1591_p1), %v1975_v49  ;;  %v1977_v52 = vld [vmem:[#allocation7 + $0x10] sm:$0xff] (!%p1591_p1)  }
 0x1bf   : > { %v1656_v56 = vpop.f32.mrb[21].mxu0  ;;  %v1704_v58 = vpop.f32.mrb[21].mxu1  ;;  %1974 = vset.pattern.permute.xlu1 (!%p1591_p1), %v2190_v51  ;;  %1973 = vset.pattern.permute.xlu0 (!%p1591_p1), %v2190_v51 }
 0x1c0   : > { %v1657_v59 = vadd.f32 %v1656_v56, %v1655_v53  ;;  %v1705_v60 = vadd.f32 %v1704_v58, %v1703_v54  ;;  %v1658_v61 = vpop.f32.mrb[22].mxu0  ;;  %v1706_v62 = vpop.f32.mrb[22].mxu1  ;;  %1747 = vmatprep.subr.bf16.mxu0 (!%p1591_p1), %v1976_v50  ;;  %1810 = vmatprep.subr.bf16.mxu1 (!%p1591_p1), %v1976_v50  ;;  %v1120_v53 = vld [vmem:[%s2470_s9 + $0x10] sm:$0xff] (!%p1591_p1)  ;;  %v1118_v54 = vld [vmem:[%s2470_s9] sm:$0xff] (!%p1591_p1)  ;;  %v1121_v56 = vld [vmem:[%s2470_s9 + $0x18] sm:$0xff] (!%p1591_p1) }
 0x1c1   : > { %v1659_v0 = vpop.f32.mrb[23].mxu0  ;;  %v1707_v2 = vpop.f32.mrb[23].mxu1  ;;  %1162 = vperm.xlu1 (!%p1591_p1), %1974, %v1120_v53   ;;  %1152 = vperm.xlu0 (!%p1591_p1), %1973, %v1118_v54   ;;  %v845_v58 = vld [vmem:[#allocation2] sm:$0xff] (!%p1591_p1)  ;;  %v1139_v54 = vld [vmem:[%s2470_s9 + $0xa8] sm:$0xff] (!%p1591_p1) }
 0x1c2   : > { %v787_v3 = vadd.f32 %v1657_v59, %v466_v55  ;;  %v803_v4 = vadd.f32 %v1705_v60, %v482_v57  ;;  %v1660_v5 = vadd.f32 %v1659_v0, %v1658_v61  ;;  %v1708_v6 = vadd.f32 %v1707_v2, %v1706_v62  ;;  %1748 = vmatpush3.bf16.msra.mxu0 (!%p1591_p1), %v1976_v50  ;;  %v1978_v55 = vld [vmem:[#allocation7 + $0x18] sm:$0xff] (!%p1591_p1)   ;;  %v1119_v57 = vld [vmem:[%s2470_s9 + $0x8] sm:$0xff] (!%p1591_p1)  ;;  %v861_v60 = vld [vmem:[#allocation2 + $0x80] sm:$0xff] (!%p1591_p1) }
 0x1c3   : > { %1818 = vmatpush3.bf16.msra.mxu1 (!%p1591_p1), %v1976_v50  ;;  %1749 = vmatprep.subr.bf16.mxu0 (!%p1591_p1), %v1977_v52  ;;  %v846_v59 = vld [vmem:[#allocation2 + $0x8] sm:$0xff] (!%p1591_p1)  ;;  %v1122_v2 = vld [vmem:[%s2470_s9 + $0x20] sm:$0xff] (!%p1591_p1) }
 0x1c4   : > { %819 = vst [vmem:[#allocation2 + $0x50] sm:$0xff] %v787_v3  ;;  %835 = vst [vmem:[#allocation2 + $0xd0] sm:$0xff] %v803_v4  ;;  %v788_v7 = vadd.f32 %v1660_v5, %v467_v63  ;;  %v804_v8 = vadd.f32 %v1708_v6, %v483_v1  ;;  %1811 = vmatprep.subr.bf16.mxu1 (!%p1591_p1), %v1977_v52  ;;  %v877_v61 = vpack.c.bf16 (!%p1591_p1), %v846_v59, %v845_v58  ;;  %v862_v62 = vld [vmem:[#allocation2 + $0x88] sm:$0xff] (!%p1591_p1)  ;;  %v1979_v63 = vld [vmem:[#allocation7 + $0x20] sm:$0xff] (!%p1591_p1)  }
 0x1c5   : > { %v885_v0 = vpack.c.bf16 (!%p1591_p1), %v862_v62, %v861_v60  ;;  %1167 = vperm.xlu1 (!%p1591_p1), %1974, %v1121_v56   ;;  %1157 = vperm.xlu0 (!%p1591_p1), %1973, %v1119_v57   ;;  %v1123_v1 = vld [vmem:[%s2470_s9 + $0x28] sm:$0xff] (!%p1591_p1)  ;;  %v1125_v4 = vld [vmem:[%s2470_s9 + $0x38] sm:$0xff] (!%p1591_p1)  ;;  %v1124_v5 = vld [vmem:[%s2470_s9 + $0x30] sm:$0xff] (!%p1591_p1) }
 0x1c6   : > { %820 = vst [vmem:[#allocation2 + $0x58] sm:$0xff] %v788_v7  ;;  %836 = vst [vmem:[#allocation2 + $0xd8] sm:$0xff] %v804_v8  ;;  %v1661_v9 = vpop.f32.mrb[24].mxu0  ;;  %v1709_v10 = vpop.f32.mrb[24].mxu1  ;;  %1750 = vmatpush3.bf16.msra.mxu0 (!%p1591_p1), %v1977_v52  ;;  %1761 = vmatprep.mubr.bf16.mxu0 (!%p1591_p1), %v877_v61  ;;  %v1980_v3 = vld [vmem:[#allocation7 + $0x28] sm:$0xff] (!%p1591_p1)   ;;  %v1981_v6 = vld [vmem:[#allocation7 + $0x30] sm:$0xff] (!%p1591_p1)  }
 0x1c7   : > { %v1662_v12 = vpop.f32.mrb[25].mxu0  ;;  %v1710_v14 = vpop.f32.mrb[25].mxu1  ;;  %1819 = vmatpush3.bf16.msra.mxu1 (!%p1591_p1), %v1977_v52  ;;  %1751 = vmatprep.subr.bf16.mxu0 (!%p1591_p1), %v1978_v55  ;;  %v1127_v7 = vld [vmem:[%s2470_s9 + $0x48] sm:$0xff] (!%p1591_p1)  ;;  %v1126_v8 = vld [vmem:[%s2470_s9 + $0x40] sm:$0xff] (!%p1591_p1)  ;;  %v1141_v59 = vld [vmem:[%s2470_s9 + $0xb8] sm:$0xff] (!%p1591_p1) }
 0x1c8   : > { %v1663_v15 = vadd.f32 %v1662_v12, %v1661_v9  ;;  %v1711_v16 = vadd.f32 %v1710_v14, %v1709_v10  ;;  %v1664_v17 = vpop.f32.mrb[26].mxu0  ;;  %v1712_v18 = vpop.f32.mrb[26].mxu1  ;;  %1812 = vmatprep.subr.bf16.mxu1 (!%p1591_p1), %v1978_v55  ;;  %1777 = vmatprep.mubr.bf16.mxu1 (!%p1591_p1), %v885_v0  ;;  %v1982_v9 = vld [vmem:[#allocation7 + $0x38] sm:$0xff] (!%p1591_p1)   ;;  %v847_v10 = vld [vmem:[#allocation2 + $0x10] sm:$0xff] (!%p1591_p1) }
 0x1c9   : > { %v1665_v20 = vpop.f32.mrb[27].mxu0  ;;  %v1713_v22 = vpop.f32.mrb[27].mxu1  ;;  %1177 = vperm.xlu1 (!%p1591_p1), %1974, %v1123_v1   ;;  %1172 = vperm.xlu0 (!%p1591_p1), %1973, %v1122_v2   ;;  %v1129_v12 = vld [vmem:[%s2470_s9 + $0x58] sm:$0xff] (!%p1591_p1)  ;;  %v863_v14 = vld [vmem:[#allocation2 + $0x90] sm:$0xff] (!%p1591_p1)  ;;  %v1143_v2 = vld [vmem:[%s2470_s9 + $0xc8] sm:$0xff] (!%p1591_p1) }
 0x1ca   : > { %v789_v23 = vadd.f32 %v1663_v15, %v468_v11  ;;  %v805_v24 = vadd.f32 %v1711_v16, %v484_v13  ;;  %v1666_v25 = vadd.f32 %v1665_v20, %v1664_v17  ;;  %v1714_v26 = vadd.f32 %v1713_v22, %v1712_v18  ;;  %1752 = vmatpush3.bf16.msra.mxu0 (!%p1591_p1), %v1978_v55  ;;  %v848_v11 = vld [vmem:[#allocation2 + $0x18] sm:$0xff] (!%p1591_p1)  ;;  %v1128_v13 = vld [vmem:[%s2470_s9 + $0x50] sm:$0xff] (!%p1591_p1)  ;;  %v849_v16 = vld [vmem:[#allocation2 + $0x20] sm:$0xff] (!%p1591_p1) }
 0x1cb   : > { %1820 = vmatpush3.bf16.msra.mxu1 (!%p1591_p1), %v1978_v55  ;;  %1753 = vmatprep.subr.bf16.mxu0 (!%p1591_p1), %v1979_v63  ;;  %v864_v15 = vld [vmem:[#allocation2 + $0x98] sm:$0xff] (!%p1591_p1)  ;;  %v850_v17 = vld [vmem:[#allocation2 + $0x28] sm:$0xff] (!%p1591_p1)  ;;  %v865_v18 = vld [vmem:[#allocation2 + $0xa0] sm:$0xff] (!%p1591_p1)  ;;  %v878_v20 = vpack.c.bf16 (!%p1591_p1), %v848_v11, %v847_v10 }
 0x1cc   : > { %821 = vst [vmem:[#allocation2 + $0x60] sm:$0xff] %v789_v23  ;;  %837 = vst [vmem:[#allocation2 + $0xe0] sm:$0xff] %v805_v24  ;;  %v790_v27 = vadd.f32 %v1666_v25, %v469_v19  ;;  %v806_v28 = vadd.f32 %v1714_v26, %v485_v21  ;;  %1813 = vmatprep.subr.bf16.mxu1 (!%p1591_p1), %v1979_v63  ;;  %v866_v19 = vld [vmem:[#allocation2 + $0xa8] sm:$0xff] (!%p1591_p1)  ;;  %v886_v21 = vpack.c.bf16 (!%p1591_p1), %v864_v15, %v863_v14  ;;  %v1130_v23 = vld [vmem:[%s2470_s9 + $0x60] sm:$0xff] (!%p1591_p1) }
 0x1cd   : > { %1187 = vperm.xlu1 (!%p1591_p1), %1974, %v1125_v4   ;;  %1182 = vperm.xlu0 (!%p1591_p1), %1973, %v1124_v5   ;;  %v1131_v22 = vld [vmem:[%s2470_s9 + $0x68] sm:$0xff] (!%p1591_p1)  ;;  %v879_v24 = vpack.c.bf16 (!%p1591_p1), %v850_v17, %v849_v16  ;;  %v887_v25 = vpack.c.bf16 (!%p1591_p1), %v866_v19, %v865_v18  ;;  %v851_v26 = vld [vmem:[#allocation2 + $0x30] sm:$0xff] (!%p1591_p1)  ;;  %v1138_v55 = vld [vmem:[%s2470_s9 + $0xa0] sm:$0xff] (!%p1591_p1) }
 0x1ce   : > { %822 = vst [vmem:[#allocation2 + $0x68] sm:$0xff] %v790_v27  ;;  %838 = vst [vmem:[#allocation2 + $0xe8] sm:$0xff] %v806_v28  ;;  %v1667_v29 = vpop.f32.mrb[28].mxu0  ;;  %v1715_v30 = vpop.f32.mrb[28].mxu1  ;;  %1754 = vmatpush3.bf16.msra.mxu0 (!%p1591_p1), %v1979_v63  ;;  %v852_v27 = vld [vmem:[#allocation2 + $0x38] sm:$0xff] (!%p1591_p1)  ;;  %v1140_v60 = vld [vmem:[%s2470_s9 + $0xb0] sm:$0xff] (!%p1591_p1) }
 0x1cf   : > { %v1668_v32 = vpop.f32.mrb[29].mxu0  ;;  %v1716_v34 = vpop.f32.mrb[29].mxu1  ;;  %1821 = vmatpush3.bf16.msra.mxu1 (!%p1591_p1), %v1979_v63  ;;  %1755 = vmatprep.subr.bf16.mxu0 (!%p1591_p1), %v1980_v3  ;;  %v1133_v28 = vld [vmem:[%s2470_s9 + $0x78] sm:$0xff] (!%p1591_p1)  ;;  %v1144_v5 = vld [vmem:[%s2470_s9 + $0xd0] sm:$0xff] (!%p1591_p1) }
 0x1d0   : > { %v1669_v35 = vadd.f32 %v1668_v32, %v1667_v29  ;;  %v1717_v36 = vadd.f32 %v1716_v34, %v1715_v30  ;;  %v1670_v37 = vpop.f32.mrb[30].mxu0  ;;  %v1718_v38 = vpop.f32.mrb[30].mxu1  ;;  %844 = sbr.rel (%p1591_p1) target bundleno = 722 (0x2d2), region = 79  ;;  %1814 = vmatprep.subr.bf16.mxu1 (!%p1591_p1), %v1980_v3  ;;  %v1132_v29 = vld [vmem:[%s2470_s9 + $0x70] sm:$0xff] (!%p1591_p1)  ;;  %v853_v32 = vld [vmem:[#allocation2 + $0x40] sm:$0xff] (!%p1591_p1)  ;;  %v1145_v4 = vld [vmem:[%s2470_s9 + $0xd8] sm:$0xff] (!%p1591_p1) }
 0x1d1   : > { %v1671_v40 = vpop.f32.mrb[31].mxu0  ;;  %v1719_v42 = vpop.f32.mrb[31].mxu1  ;;  %1197 = vperm.xlu1 (!%p1591_p1), %1974, %v1127_v7   ;;  %1192 = vperm.xlu0 (!%p1591_p1), %1973, %v1126_v8   ;;  %v867_v30 = vld [vmem:[#allocation2 + $0xb0] sm:$0xff] (!%p1591_p1)  ;;  %v869_v34 = vld [vmem:[#allocation2 + $0xc0] sm:$0xff] (!%p1591_p1)  ;;  %v1149_v8 = vld [vmem:[%s2470_s9 + $0xf8] sm:$0xff] (!%p1591_p1) }
 0x1d2   : > { %v791_v43 = vadd.f32 %v1669_v35, %v470_v31  ;;  %v807_v44 = vadd.f32 %v1717_v36, %v486_v33  ;;  %v1672_v45 = vadd.f32 %v1671_v40, %v1670_v37  ;;  %v1720_v46 = vadd.f32 %v1719_v42, %v1718_v38  ;;  %1756 = vmatpush3.bf16.msra.mxu0 (!%p1591_p1), %v1980_v3  ;;  %v868_v31 = vld [vmem:[#allocation2 + $0xb8] sm:$0xff] (!%p1591_p1)  ;;  %v854_v33 = vld [vmem:[#allocation2 + $0x48] sm:$0xff] (!%p1591_p1)  ;;  %v855_v42 = vld [vmem:[#allocation2 + $0x50] sm:$0xff] (!%p1591_p1) }
 0x1d3   : > { %1822 = vmatpush3.bf16.msra.mxu1 (!%p1591_p1), %v1980_v3  ;;  %1757 = vmatprep.subr.bf16.mxu0 (!%p1591_p1), %v1981_v6  ;;  %v870_v35 = vld [vmem:[#allocation2 + $0xc8] sm:$0xff] (!%p1591_p1)  ;;  %v880_v36 = vpack.c.bf16 (!%p1591_p1), %v852_v27, %v851_v26  ;;  %v888_v37 = vpack.c.bf16 (!%p1591_p1), %v868_v31, %v867_v30  ;;  %v881_v40 = vpack.c.bf16 (!%p1591_p1), %v854_v33, %v853_v32  ;;  %v873_v50 = vld [vmem:[#allocation2 + $0xe0] sm:$0xff] (!%p1591_p1) }
 0x1d4   : > { %823 = vst [vmem:[#allocation2 + $0x70] sm:$0xff] %v791_v43  ;;  %839 = vst [vmem:[#allocation2 + $0xf0] sm:$0xff] %v807_v44  ;;  %v792_v47 = vadd.f32 %v1672_v45, %v471_v39  ;;  %v808_v48 = vadd.f32 %v1720_v46, %v487_v41  ;;  %1815 = vmatprep.subr.bf16.mxu1 (!%p1591_p1), %v1981_v6  ;;  %v1135_v38 = vld [vmem:[%s2470_s9 + $0x88] sm:$0xff] (!%p1591_p1)  ;;  %v1134_v39 = vld [vmem:[%s2470_s9 + $0x80] sm:$0xff] (!%p1591_p1)  ;;  %v889_v41 = vpack.c.bf16 (!%p1591_p1), %v870_v35, %v869_v34 }
 0x1d5   : > { %1207 = vperm.xlu1 (!%p1591_p1), %1974, %v1129_v12   ;;  %1202 = vperm.xlu0 (!%p1591_p1), %1973, %v1128_v13   ;;  %v856_v43 = vld [vmem:[#allocation2 + $0x58] sm:$0xff] (!%p1591_p1)  ;;  %v1136_v45 = vld [vmem:[%s2470_s9 + $0x90] sm:$0xff] (!%p1591_p1)  ;;  %v858_v49 = vld [vmem:[#allocation2 + $0x68] sm:$0xff] (!%p1591_p1) }
 0x1d6   : > { %824 = vst [vmem:[#allocation2 + $0x78] sm:$0xff] %v792_v47  ;;  %840 = vst [vmem:[#allocation2 + $0xf8] sm:$0xff] %v808_v48  ;;  %1758 = vmatpush3.bf16.msra.mxu0 (!%p1591_p1), %v1981_v6  ;;  %v1137_v44 = vld [vmem:[%s2470_s9 + $0x98] sm:$0xff] (!%p1591_p1)  ;;  %v871_v46 = vld [vmem:[#allocation2 + $0xd0] sm:$0xff] (!%p1591_p1)  ;;  %v882_v52 = vpack.c.bf16 (!%p1591_p1), %v856_v43, %v855_v42 }
 0x1d7   : > { %1823 = vmatpush3.bf16.msra.mxu1 %v1981_v6  ;;  %1759 = vmatprep.subr.bf16.mxu0 %v1982_v9  ;;  %v872_v47 = vld [vmem:[#allocation2 + $0xd8] sm:$0xff]  ;;  %v857_v48 = vld [vmem:[#allocation2 + $0x60] sm:$0xff]  ;;  %v874_v51 = vld [vmem:[#allocation2 + $0xe8] sm:$0xff] }
 0x1d8   : > { %1816 = vmatprep.subr.bf16.mxu1 %v1982_v9  ;;  %v890_v53 = vpack.c.bf16 %v872_v47, %v871_v46  ;;  %v883_v56 = vpack.c.bf16 %v858_v49, %v857_v48  ;;  %v891_v57 = vpack.c.bf16 %v874_v51, %v873_v50  ;;  %v1142_v3 = vld [vmem:[%s2470_s9 + $0xc0] sm:$0xff]  ;;  %v1147_v6 = vld [vmem:[%s2470_s9 + $0xe8] sm:$0xff] }
 0x1d9   : > { %1217 = vperm.xlu1 %1974, %v1131_v22   ;;  %1212 = vperm.xlu0 %1973, %v1130_v23   ;;  %v1146_v7 = vld [vmem:[%s2470_s9 + $0xe0] sm:$0xff] }
 0x1da   : > { %1760 = vmatpush3.bf16.msra.mxu0 %v1982_v9 }
 0x1db   : > { %1824 = vmatpush3.bf16.msra.mxu1 %v1982_v9  ;;  %v859_v58 = vld [vmem:[#allocation2 + $0x70] sm:$0xff] }
 0x1dc   : > { %v875_v62 = vld [vmem:[#allocation2 + $0xf0] sm:$0xff] }
 0x1dd   : > { %1762 = vmatmul.mubr.bf16.vlgmr.msra.gmra.mrb[0].mxu0 %v878_v20  ;;  %1227 = vperm.xlu1 %1974, %v1133_v28   ;;  %v860_v61 = vld [vmem:[#allocation2 + $0x78] sm:$0xff]  ;;  %v1148_v9 = vld [vmem:[%s2470_s9 + $0xf0] sm:$0xff] }
 0x1de   : > { %1778 = vmatmul.mubr.bf16.vlgmr.msra.gmra.mrb[0].mxu1 %v886_v21  ;;  %1765 = vmatprep.mubr.bf16.mxu0 %v879_v24  ;;  %v876_v63 = vld [vmem:[#allocation2 + $0xf8] sm:$0xff]  ;;  %v884_v0 = vpack.c.bf16 %v860_v61, %v859_v58 }
 0x1df   : > { %1781 = vmatprep.mubr.bf16.mxu1 %v887_v25  ;;  %1222 = vperm.xlu0 %1973, %v1132_v29   ;;  %v892_v1 = vpack.c.bf16 %v876_v63, %v875_v62 }
 0x1e1   : > { %1237 = vperm.xlu1 %1974, %v1135_v38  }
 0x1e3   : > { %1232 = vperm.xlu0 %1973, %v1134_v39  }
 0x1e5   : > { %1766 = vmatmul.mubr.bf16.gmra.mrb[4].mxu0 %v880_v36  ;;  %1247 = vperm.xlu1 %1974, %v1137_v44  }
 0x1e6   : > { %1782 = vmatmul.mubr.bf16.gmra.mrb[4].mxu1 %v888_v37  ;;  %1769 = vmatprep.mubr.bf16.mxu0 %v881_v40  ;;  %v2567_v37 = vld [vmem:[%s2777_s8] ss:$0 sm:$0xff] }
 0x1e7   : > { %1785 = vmatprep.mubr.bf16.mxu1 %v889_v41  ;;  %1242 = vperm.xlu0 %1973, %v1136_v45  }
 0x1e9   : > { %1257 = vperm.xlu1 %1974, %v1139_v54  }
 0x1eb   : > { %1252 = vperm.xlu0 %1973, %v1138_v55  }
 0x1ed   : > { %1770 = vmatmul.mubr.bf16.gmra.mrb[8].mxu0 %v882_v52  ;;  %1267 = vperm.xlu1 %1974, %v1141_v59  }
 0x1ee   : > { %1786 = vmatmul.mubr.bf16.gmra.mrb[8].mxu1 %v890_v53  ;;  %1773 = vmatprep.mubr.bf16.mxu0 %v883_v56 }
 0x1ef   : > { %1789 = vmatprep.mubr.bf16.mxu1 %v891_v57  ;;  %1262 = vperm.xlu0 %1973, %v1140_v60  }
 0x1f1   : > { %1277 = vperm.xlu1 %1974, %v1143_v2  }
 0x1f3   : > { %1272 = vperm.xlu0 %1973, %v1142_v3  }
 0x1f5   : > { %1774 = vmatmul.mubr.bf16.gmra.mrb[12].mxu0 %v884_v0  ;;  %1287 = vperm.xlu1 %1974, %v1145_v4  }
 0x1f6   : > { %1790 = vmatmul.mubr.bf16.gmra.mrb[12].mxu1 %v892_v1 }
 0x1f7   : > { %1282 = vperm.xlu0 %1973, %v1144_v5  }
 0x1f9   : > { %1297 = vperm.xlu1 %1974, %v1147_v6  }
 0x1fb   : > { %1292 = vperm.xlu0 %1973, %v1146_v7  }
 0x1fd   : > { %1307 = vperm.xlu1 %1974, %v1149_v8  }
 0x1ff   : > { %1302 = vperm.xlu0 %1973, %v1148_v9  }
 0x240   : > { %v1163_v10 = vpop.permute.xlu1 %1162  ;;  %v1153_v11 = vpop.permute.xlu0 %1152 }
 0x244   : > { %v1168_v12 = vpop.permute.xlu1 %1167  ;;  %v1158_v13 = vpop.permute.xlu0 %1157 }
 0x248   : > { %v2540_v14 = vpop.permute.xlu1 %1177  ;;  %v1173_v15 = vpop.permute.xlu0 %1172 }
 0x24c   : > { %v2542_v16 = vpop.permute.xlu1 %1187  ;;  %v1183_v17 = vpop.permute.xlu0 %1182 }
 0x250   : > { %v2544_v18 = vpop.permute.xlu1 %1197  ;;  %v2546_v19 = vpop.permute.xlu0 %1192 }
 0x254   : > { %v2548_v20 = vpop.permute.xlu1 %1207  ;;  %v2550_v21 = vpop.permute.xlu0 %1202 }
 0x258   : > { %v2552_v22 = vpop.permute.xlu1 %1217  ;;  %v2554_v23 = vpop.permute.xlu0 %1212 }
 0x25c   : > { %v2556_v24 = vpop.permute.xlu1 %1227 }
 0x25e   : > { %v2558_v25 = vpop.permute.xlu0 %1222 }
 0x260   : > { %v1238_v26 = vpop.permute.xlu1 %1237 }
 0x262   : > { %v1233_v27 = vpop.permute.xlu0 %1232 }
 0x264   : > { %v1248_v28 = vpop.permute.xlu1 %1247 }
 0x266   : > { %v1243_v29 = vpop.permute.xlu0 %1242 }
 0x268   : > { %v1258_v30 = vpop.permute.xlu1 %1257 }
 0x26a   : > { %v1253_v31 = vpop.permute.xlu0 %1252 }
 0x26c   : > { %v1268_v32 = vpop.permute.xlu1 %1267 }
 0x26e   : > { %v1263_v33 = vpop.permute.xlu0 %1262 }
 0x270   : > { %v2560_v34 = vpop.permute.xlu1 %1277 }
 0x272   : > { %v2562_v35 = vpop.permute.xlu0 %1272 }
 0x274   : > { %v1288_v61 = vpop.permute.xlu1 %1287 }
 0x276   : > { %v1283_v62 = vpop.permute.xlu0 %1282 }
 0x2b0   : > { %v1763_v36 = vpop.f32.mrb[0].mxu0 }
 0x2b1   : > { %v1779_v38 = vpop.f32.mrb[0].mxu1  ;;  %v1312_v39 = vmul.f32 %v1763_v36, %v1163_v10  ;;  %v991_v41 = vpop.f32.mrb[1].mxu0 }
 0x2b2   : > { %v1328_v40 = vmul.f32 %v1779_v38, %v1243_v29  ;;  %v1055_v42 = vpop.f32.mrb[1].mxu1  ;;  %v1310_v43 = vmul.f32 %v1153_v11, %v991_v41  ;;  %v1764_v45 = vpop.f32.mrb[2].mxu0 }
 0x2b3   : > { %v1326_v44 = vmul.f32 %v1233_v27, %v1055_v42  ;;  %v1780_v46 = vpop.f32.mrb[2].mxu1  ;;  %v1351_v47 = vadd.f32 %v2567_v37, %v1312_v39  ;;  %v1313_v49 = vmul.f32 %v1764_v45, %v1168_v12  ;;  %v994_v51 = vpop.f32.mrb[3].mxu0 }
 0x2b4   : > { %v1367_v48 = vadd.f32 %v2567_v37, %v1328_v40  ;;  %v1329_v50 = vmul.f32 %v1780_v46, %v1248_v28  ;;  %v1058_v52 = vpop.f32.mrb[3].mxu1  ;;  %v1349_v53 = vadd.f32 %v2567_v37, %v1310_v43  ;;  %v1311_v55 = vmul.f32 %v1158_v13, %v994_v51  ;;  %v1293_v36 = vpop.permute.xlu0 %1292 }
 0x2b5   : > { %v1365_v54 = vadd.f32 %v2567_v37, %v1326_v44  ;;  %v1327_v56 = vmul.f32 %v1238_v26, %v1058_v52  ;;  %1383 = vst [vmem:[%s2472_s6 + $0x10] sm:$0xff] %v1351_v47  ;;  %v1352_v57 = vadd.f32 %v2567_v37, %v1313_v49 }
 0x2b6   : > { %1399 = vst [vmem:[%s2472_s6 + $0x90] sm:$0xff] %v1367_v48  ;;  %v1368_v58 = vadd.f32 %v2567_v37, %v1329_v50  ;;  %1381 = vst [vmem:[%s2472_s6] sm:$0xff] %v1349_v53  ;;  %v1350_v59 = vadd.f32 %v2567_v37, %v1311_v55 }
 0x2b7   : > { %1397 = vst [vmem:[%s2472_s6 + $0x80] sm:$0xff] %v1365_v54  ;;  %v1366_v60 = vadd.f32 %v2567_v37, %v1327_v56  ;;  %1384 = vst [vmem:[%s2472_s6 + $0x18] sm:$0xff] %v1352_v57 }
 0x2b8   : > { %1400 = vst [vmem:[%s2472_s6 + $0x98] sm:$0xff] %v1368_v58  ;;  %1382 = vst [vmem:[%s2472_s6 + $0x8] sm:$0xff] %v1350_v59  ;;  %v1767_v63 = vpop.f32.mrb[4].mxu0  ;;  %v1303_v57 = vpop.permute.xlu0 %1302 }
 0x2b9   : > { %1398 = vst [vmem:[%s2472_s6 + $0x88] sm:$0xff] %v1366_v60  ;;  %v1783_v0 = vpop.f32.mrb[4].mxu1  ;;  %v1316_v1 = vmul.f32 %v1767_v63, %v1183_v17  ;;  %v1007_v3 = vpop.f32.mrb[5].mxu0 }
 0x2ba   : > { %v1332_v2 = vmul.f32 %v1783_v0, %v1263_v33  ;;  %v1071_v4 = vpop.f32.mrb[5].mxu1  ;;  %v1314_v5 = vmul.f32 %v1173_v15, %v1007_v3  ;;  %v1768_v7 = vpop.f32.mrb[6].mxu0 }
 0x2bb   : > { %v1330_v6 = vmul.f32 %v1253_v31, %v1071_v4  ;;  %v1784_v8 = vpop.f32.mrb[6].mxu1  ;;  %v1355_v9 = vadd.f32 %v2567_v37, %v1316_v1  ;;  %v1317_v11 = vmul.f32 %v1768_v7, %v2542_v16  ;;  %v1010_v13 = vpop.f32.mrb[7].mxu0 }
 0x2bc   : > { %v1371_v10 = vadd.f32 %v2567_v37, %v1332_v2  ;;  %v1333_v12 = vmul.f32 %v1784_v8, %v1268_v32  ;;  %v1074_v17 = vpop.f32.mrb[7].mxu1  ;;  %v1353_v26 = vadd.f32 %v2567_v37, %v1314_v5  ;;  %v1315_v27 = vmul.f32 %v2540_v14, %v1010_v13  ;;  %v1298_v33 = vpop.permute.xlu1 %1297 }
 0x2bd   : > { %v1369_v15 = vadd.f32 %v2567_v37, %v1330_v6  ;;  %v1331_v28 = vmul.f32 %v1258_v30, %v1074_v17  ;;  %1387 = vst [vmem:[%s2472_s6 + $0x30] sm:$0xff] %v1355_v9  ;;  %v1356_v29 = vadd.f32 %v2567_v37, %v1317_v11 }
 0x2be   : > { %1403 = vst [vmem:[%s2472_s6 + $0xb0] sm:$0xff] %v1371_v10  ;;  %v1372_v16 = vadd.f32 %v2567_v37, %v1333_v12  ;;  %1385 = vst [vmem:[%s2472_s6 + $0x20] sm:$0xff] %v1353_v26  ;;  %v1354_v31 = vadd.f32 %v2567_v37, %v1315_v27 }
 0x2bf   : > { %1401 = vst [vmem:[%s2472_s6 + $0xa0] sm:$0xff] %v1369_v15  ;;  %v1370_v32 = vadd.f32 %v2567_v37, %v1331_v28  ;;  %1388 = vst [vmem:[%s2472_s6 + $0x38] sm:$0xff] %v1356_v29 }
 0x2c0   : > { %1404 = vst [vmem:[%s2472_s6 + $0xb8] sm:$0xff] %v1372_v16  ;;  %1386 = vst [vmem:[%s2472_s6 + $0x28] sm:$0xff] %v1354_v31  ;;  %v1771_v14 = vpop.f32.mrb[8].mxu0  ;;  %v1308_v56 = vpop.permute.xlu1 %1307 }
 0x2c1   : > { %1402 = vst [vmem:[%s2472_s6 + $0xa8] sm:$0xff] %v1370_v32  ;;  %v1787_v30 = vpop.f32.mrb[8].mxu1  ;;  %v1320_v38 = vmul.f32 %v1771_v14, %v2550_v21  ;;  %v1023_v40 = vpop.f32.mrb[9].mxu0 }
 0x2c2   : > { %v1336_v39 = vmul.f32 %v1787_v30, %v1283_v62  ;;  %v1087_v41 = vpop.f32.mrb[9].mxu1  ;;  %v1318_v42 = vmul.f32 %v2546_v19, %v1023_v40  ;;  %v1772_v44 = vpop.f32.mrb[10].mxu0 }
 0x2c3   : > { %v1334_v43 = vmul.f32 %v2562_v35, %v1087_v41  ;;  %v1788_v45 = vpop.f32.mrb[10].mxu1  ;;  %v1359_v46 = vadd.f32 %v2567_v37, %v1320_v38  ;;  %v1321_v48 = vmul.f32 %v1772_v44, %v2548_v20  ;;  %v1026_v49 = vpop.f32.mrb[11].mxu0 }
 0x2c4   : > { %v1375_v47 = vadd.f32 %v2567_v37, %v1336_v39  ;;  %v1337_v21 = vmul.f32 %v1788_v45, %v1288_v61  ;;  %v1090_v50 = vpop.f32.mrb[11].mxu1  ;;  %v1357_v51 = vadd.f32 %v2567_v37, %v1318_v42  ;;  %v1319_v35 = vmul.f32 %v2544_v18, %v1026_v49 }
 0x2c5   : > { %v1373_v19 = vadd.f32 %v2567_v37, %v1334_v43  ;;  %v1335_v52 = vmul.f32 %v2560_v34, %v1090_v50  ;;  %1391 = vst [vmem:[%s2472_s6 + $0x50] sm:$0xff] %v1359_v46  ;;  %v1360_v53 = vadd.f32 %v2567_v37, %v1321_v48 }
 0x2c6   : > { %1407 = vst [vmem:[%s2472_s6 + $0xd0] sm:$0xff] %v1375_v47  ;;  %v1376_v20 = vadd.f32 %v2567_v37, %v1337_v21  ;;  %1389 = vst [vmem:[%s2472_s6 + $0x40] sm:$0xff] %v1357_v51  ;;  %v1358_v54 = vadd.f32 %v2567_v37, %v1319_v35 }
 0x2c7   : > { %1405 = vst [vmem:[%s2472_s6 + $0xc0] sm:$0xff] %v1373_v19  ;;  %v1374_v55 = vadd.f32 %v2567_v37, %v1335_v52  ;;  %1392 = vst [vmem:[%s2472_s6 + $0x58] sm:$0xff] %v1360_v53 }
 0x2c8   : > { %1408 = vst [vmem:[%s2472_s6 + $0xd8] sm:$0xff] %v1376_v20  ;;  %1390 = vst [vmem:[%s2472_s6 + $0x48] sm:$0xff] %v1358_v54  ;;  %v1775_v18 = vpop.f32.mrb[12].mxu0 }
 0x2c9   : > { %1406 = vst [vmem:[%s2472_s6 + $0xc8] sm:$0xff] %v1374_v55  ;;  %v1791_v34 = vpop.f32.mrb[12].mxu1  ;;  %v1324_v58 = vmul.f32 %v1775_v18, %v2558_v25  ;;  %v1039_v60 = vpop.f32.mrb[13].mxu0 }
 0x2ca   : > { %v1340_v59 = vmul.f32 %v1791_v34, %v1303_v57  ;;  %v1103_v61 = vpop.f32.mrb[13].mxu1  ;;  %v1322_v62 = vmul.f32 %v2554_v23, %v1039_v60  ;;  %v1776_v0 = vpop.f32.mrb[14].mxu0 }
 0x2cb   : > { %v1338_v63 = vmul.f32 %v1293_v36, %v1103_v61  ;;  %v1792_v1 = vpop.f32.mrb[14].mxu1  ;;  %v1363_v2 = vadd.f32 %v2567_v37, %v1324_v58  ;;  %v1325_v4 = vmul.f32 %v1776_v0, %v2556_v24  ;;  %v1042_v5 = vpop.f32.mrb[15].mxu0 }
 0x2cc   : > { %v1379_v3 = vadd.f32 %v2567_v37, %v1340_v59  ;;  %v1341_v25 = vmul.f32 %v1792_v1, %v1308_v56  ;;  %v1106_v6 = vpop.f32.mrb[15].mxu1  ;;  %v1361_v23 = vadd.f32 %v2567_v37, %v1322_v62  ;;  %v1323_v8 = vmul.f32 %v2552_v22, %v1042_v5 }
 0x2cd   : > { %v1377_v7 = vadd.f32 %v2567_v37, %v1338_v63  ;;  %v1339_v9 = vmul.f32 %v1298_v33, %v1106_v6  ;;  %1395 = vst [vmem:[%s2472_s6 + $0x70] sm:$0xff] %v1363_v2  ;;  %v1364_v10 = vadd.f32 %v2567_v37, %v1325_v4 }
 0x2ce   : > { %1411 = vst [vmem:[%s2472_s6 + $0xf0] sm:$0xff] %v1379_v3  ;;  %v1380_v24 = vadd.f32 %v2567_v37, %v1341_v25  ;;  %1393 = vst [vmem:[%s2472_s6 + $0x60] sm:$0xff] %v1361_v23  ;;  %v1362_v11 = vadd.f32 %v2567_v37, %v1323_v8 }
 0x2cf   : > { %1409 = vst [vmem:[%s2472_s6 + $0xe0] sm:$0xff] %v1377_v7  ;;  %v1378_v12 = vadd.f32 %v2567_v37, %v1339_v9  ;;  %1396 = vst [vmem:[%s2472_s6 + $0x78] sm:$0xff] %v1364_v10 }
 0x2d0   : > { %1412 = vst [vmem:[%s2472_s6 + $0xf8] sm:$0xff] %v1380_v24  ;;  %1394 = vst [vmem:[%s2472_s6 + $0x68] sm:$0xff] %v1362_v11 }
 0x2d1   : > { %1410 = vst [vmem:[%s2472_s6 + $0xe8] sm:$0xff] %v1378_v12 }
 0x2d2 PF: > { %s2778_s21 = sld [smem:[#allocation21_spill]]  ;;  %s1608_s13 = sshll.u32 %s2169_s27, 12 }
 0x2d3   : > { %s2779_s4 = sld [smem:[#allocation24_spill]]  ;;  %s1427_s16 = sshll.u32 %s2472_s6, 4  ;;  %s2652_s16 = int_to_ptr.vmem [resolvable:$true] %s1427_s16 }
 0x2d4   : > { %s2656_s17 = scalar_lea.sflag [#allocation6], %s358_s24  ;;  %s2039_s14 = scalar_lea.vmem %s2652_s16, 4096 }
 0x2d5   : > { %p2040_p4 = scmp.ne.s32.totalorder %s2652_s16, %s2039_s14  ;;  %s2191_s27 = smov [#allocation9]  }
 0x2d6   : > { %s2043_s5 = sshll.u32 %s2191_s27, 4  ;;  %s2044_s5 = int_to_ptr.vmem [resolvable:$false] %s2043_s5 }
 0x2d7   : > { %s2045_s18 = scalar_lea.vmem %s2044_s5, 8192  ;;  %p2046_p2 = scmp.lt.s32.totalorder %s2652_s16, %s2044_s5 }
 0x2d8   : > { %p2780_p6 = scmp.ne.s32.totalorder %s2778_s21, 0  ;;  %p2047_p3 = scmp.lt.s32.totalorder %s2045_s18, %s2039_s14 }
 0x2d9   : > { %s2649_s15 = scalar_lea.hbm %s2779_s4, %s1608_s13 }
 0x2da   : > { %p2041_p11 = pnand %p2040_p4, %p2780_p6  ;;  %p2048_p10 = por %p2047_p3, %p2046_p2 }
 0x2dc   : > { %p2042_p0 = pneg %p2041_p11 }
 0x2de   : > { %p2049_p5 = pnand %p2048_p10, %p2042_p0 }
 0x2e0   : > { %2052 = shalt.err (!%p2049_p5)
}
 0x2e1   : > { %s2053_s24 = scalar_lea.hbm %s2649_s15, 4096  ;;  %s2057_s20 = scalar_lea.hbm %s2779_s4, 8192 }
 0x2e2   : > { %p2054_p12 = scmp.ne.s32.totalorder %s2649_s15, %s2053_s24  ;;  %p2058_p8 = scmp.lt.u32.totalorder %s2649_s15, %s2779_s4 }
 0x2e3   : > { %p2059_p13 = scmp.lt.u32.totalorder %s2057_s20, %s2053_s24  ;;  %p2061_p4 = scmp.lt.u32.totalorder %s2053_s24, %s2649_s15 }
 0x2e4   : > { %p2055_p9 = pnand %p2054_p12, %p2780_p6 }
 0x2e5   : > { %p2060_p1 = por %p2059_p13, %p2058_p8 }
 0x2e6   : > { %p2056_p7 = pneg %p2055_p9 }
 0x2e7   : > { %p2062_p11 = por %p2061_p4, %p2060_p1 }
 0x2e9   : > { %p2063_p0 = pnand %p2062_p11, %p2056_p7 }
 0x2eb   : > { %2066 = shalt.err (!%p2063_p0)
}
 0x2ec   : > { %s2192_s11 = smov 128   ;;  %s2193_s8 = smov 8  }
 0x2ed   : > { %1831 = dma.vmem_to_hbm [thread:$0]  (%p2780_p6), %s2652_s16, 4096, %s2649_s15, %s2656_s17, %s2192_s11, %s2192_s11, %s2193_s8  }
 0x2ee PF: > { %s2781_s13 = sld [smem:[#allocation13_spill]]  ;;  %s2782_s12 = sld [smem:[#allocation22_spill]] }
 0x2ef   : > { %p1843_p2 = scmp.ge.s32.totalorder %s2181_s30, 2 }
 0x2f4   : > { %s1442_s26 = sand.u32 1, %s2781_s13   ;;  %p2783_p3 = scmp.ne.s32.totalorder %s2782_s12, 0 }
 0x2f5   : > { %s1443_s14 = scalar_lea.sflag [#allocation6], %s1442_s26 }
 0x2f6   : > { %p1838_p10 = pnand %p1843_p2, %p2783_p3 }
 0x2f8   : > { %2128 = dma.done.wait (!%p1838_p10), %s1443_s14, 4096  }
 0x2f9   : > { %2130 = vsyncadd (!%p1838_p10), %s1443_s14, 4294963200  ;;  %s22_s30 = sadd.s32 1, %s2181_s30   ;;  %s2785_s21 = sld [smem:[#allocation14_spill]] }
 0x2fa   : > { %p2685_p5 = scmp.ge.s32.totalorder %s22_s30, 6   ;;  %s2786_s20 = sld [smem:[#allocation20_spill]] }
 0x2fb   : > { %s2787_s15 = sld [smem:[#allocation18_spill]]  ;;  %s2788_s16 = sld [smem:[#allocation19_spill]] }
 0x2fc   : > { %s2789_s17 = sld [smem:[#allocation16_spill]]  ;;  %s2790_s5 = sld [smem:[#allocation17_spill]] }
 0x2fd   : > { %s2792_s18 = smov %s2137_s19  ;;  %s2797_s24 = smov %s2161_s25 }
 0x2fe   : > { %s2799_s26 = smov %s2173_s28  ;;  %s2800_s27 = smov %s2177_s29 }
 0x2ff   : > { %s2793_s19 = smov %s2785_s21  ;;  %s2794_s21 = smov %s2149_s22 }
 0x300   : > { %s2795_s22 = smov %s2153_s23  ;;  %21 = sbr.rel (!%p2685_p5) target bundleno = 14 (0xe), region = 131 }
 0x301   : > { %s2796_s23 = smov %s2787_s15  ;;  %s2798_s25 = smov %s2788_s16 }
 0x302   : > { %s2801_s28 = smov %s2789_s17  ;;  %s2802_s29 = smov %s2790_s5 }
 0x307   :  { %1448 = vsyncpa [#allocation5], 1 }
 0x308   :  { %1450 = vsyncpa [#allocation5 + $0x1], 1 }
 0x309   :  { %1451 = vsyncpa [#allocation8], 1 }
 0x30a   :  { %1452 = vsyncpa [#allocation6], 1 }
 0x30b   :  { %1454 = vsyncpa [#allocation6 + $0x1], 1 }

</bundles_post_ra>
